<compile_context>
chip_gen: v6e
topology: v6e:2x2x1
jax: 0.10.0
libtpu: 0.0.40
codegen_flags: <defaults>
</compile_context>

<pallas_src>
import functools

import jax
import jax.numpy as jnp
from jax import lax
from jax.experimental import pallas as pl
from jax.experimental.pallas import tpu as pltpu


def _conv_ps_mish_kernel(x_ref, w_ref, b_ref, o_ref, *, th, w_dim, cin, cout):
    # x_ref: (1, 1, TH+2, W+2, Cin)  bf16  halo'd NHWC input row-tile
    # w_ref: (9, Cout, Cin)          bf16  conv weights, tap-major (dy, dx)
    # b_ref: (Cout, 1)               f32   bias column (lane-broadcast)
    # o_ref: (1, Cout, TH*W)               conv->mish output, NCHW-flat, lane-dense
    x = x_ref[0, 0]                                        # (TH+2, W+2, Cin)

    zt = None                                              # (Cout, TH*W) f32 accumulator
    for dy in range(3):
        for dx in range(3):
            xs = x[dy:dy + th, dx:dx + w_dim, :].reshape(th * w_dim, cin)  # (M, Cin) bf16
            wk = w_ref[dy * 3 + dx]                                         # (Cout, Cin) bf16
            # A @ B^T on the MXU: (Cout, Cin) x (M, Cin) -> (Cout, M).  The accumulator comes
            # out directly with the big M = TH*W dim in lanes -> unmasked, lane-dense stores.
            part = lax.dot_general(
                wk, xs, (((1,), (1,)), ((), ())),
                preferred_element_type=jnp.float32)
            zt = part if zt is None else zt + part

    z = zt + b_ref[...]                                    # broadcast (Cout, 1) over lanes

    # mish(z) = z * tanh(softplus(z)), reduced with t = exp(-|z|) (stable for all z):
    #   z >= 0: (1 + 2t) / (1 + 2t + 2t^2)
    #   z <  0: (2t + t^2) / (2 + 2t + t^2)
    t = jnp.exp(-jnp.abs(z))
    t2 = t * t
    pos = z >= 0.0
    num = jnp.where(pos, 1.0 + 2.0 * t, 2.0 * t + t2)
    den = jnp.where(pos, 1.0 + 2.0 * t + 2.0 * t2, 2.0 + 2.0 * t + t2)
    y = z * (num * pl.reciprocal(den, approx=True))        # divide rides the EUP slot

    o_ref[0] = y.astype(o_ref.dtype)


def _pick_row_tile(h, w, cin, cout):
    """Largest divisor-of-H row tile whose per-step footprint fits a conservative VMEM budget.

    Keeps the output block's lane dim (TH*W) a multiple of 128 (unmasked stores) unless the
    whole image is one tile.  Budget sized for v7x (32 MiB scoped / 64 MiB physical VMEM per
    TensorCore); v5e/v6e have more headroom.
    """
    budget = 12 * 2 ** 20

    def step_bytes(th):
        in_b = 2 * (th + 2) * (w + 2) * cin * 2            # bf16 input tile, double-buffered
        w_b = 2 * 9 * cout * cin * 2                       # bf16 weights, double-buffered
        acc_b = 4 * th * w * cout * 4                      # f32 accumulator + mish temps
        out_b = 2 * th * w * cout * 4                      # output tile, double-buffered
        sl_b = th * w * cin * 2                            # shifted-slice staging
        return in_b + w_b + acc_b + out_b + sl_b

    divisors = [d for d in range(h, 0, -1) if h % d == 0]
    candidates = [d for d in divisors if d == h or (d * w) % 128 == 0]
    for th in candidates:
        if step_bytes(th) <= budget:
            return th
    # TODO(synk): halo-DMA (memory_space=pl.ANY) row tiling for images whose smallest aligned
    #             row tile still exceeds the VMEM budget.
    return candidates[-1]


def upsample_block_pallas(x, w, b, up_scale):
    """x: (N, Cin, H, W) NCHW; w: (Cin*r^2, Cin, 3, 3); b: (Cin*r^2,).

    Returns (N, Cin, H*r, W*r), matching the PyTorch UpsampleBLock forward.
    """
    n, cin, h, w_dim = x.shape
    cout = w.shape[0]
    r = up_scale
    c_base = cout // (r * r)
    orig_dtype = x.dtype

    th = _pick_row_tile(h, w_dim, cin, cout)
    n_ht = h // th

    # NCHW -> NHWC, zero-pad for the 3x3 / pad=1 conv, bf16 operand stream.
    x_nhwc = jnp.transpose(x, (0, 2, 3, 1)).astype(jnp.bfloat16)
    x_pad = jnp.pad(x_nhwc, ((0, 0), (1, 1), (1, 1), (0, 0)))        # (N, H+2, W+2, Cin)

    # Overlapping (halo'd) row tiles: (N, nH, TH+2, W+2, Cin).  Only the 2-row halo of the
    # (small) input is duplicated; all BlockSpecs stay plain Blocked specs.
    if n_ht == 1:
        x_tiles = x_pad[:, None]
    else:
        x_tiles = jnp.stack(
            [x_pad[:, t * th: t * th + th + 2] for t in range(n_ht)], axis=1)

    # Weights (Cout, Cin, 3, 3) -> (3, 3, Cout, Cin) -> (9, Cout, Cin): tap order (dy, dx)
    # matches the kernel's shifted slices.  Bias as an f32 column for lane-broadcast.
    w_taps = jnp.transpose(w, (2, 3, 0, 1)).reshape(9, cout, cin).astype(jnp.bfloat16)
    b_col = b.astype(jnp.float32).reshape(cout, 1)

    kernel = functools.partial(
        _conv_ps_mish_kernel, th=th, w_dim=w_dim, cin=cin, cout=cout)

    # NCHW-flat conv->mish output: (N, Cout, H*W); out block (1, Cout, TH*W) is lane-dense.
    y = pl.pallas_call(
        kernel,
        out_shape=jax.ShapeDtypeStruct((n, cout, h * w_dim), orig_dtype),
        grid_spec=pltpu.PrefetchScalarGridSpec(
            num_scalar_prefetch=0,
            grid=(n, n_ht),
            in_specs=[
                pl.BlockSpec((1, 1, th + 2, w_dim + 2, cin),
                             lambda i, t: (i, t, 0, 0, 0)),
                pl.BlockSpec((9, cout, cin), lambda i, t: (0, 0, 0)),
                pl.BlockSpec((cout, 1), lambda i, t: (0, 0)),
            ],
            out_specs=pl.BlockSpec((1, cout, th * w_dim), lambda i, t: (i, 0, t)),
        ),
        compiler_params=pltpu.CompilerParams(
            dimension_semantics=("parallel", "parallel"),
            vmem_limit_bytes=32 * 1024 * 1024,
        ),
    )(x_tiles, w_taps, b_col)

    # PixelShuffle (pure permutation; mish is elementwise so it commutes):
    # (N, C*r*r, H, W) -> (N, C, H*r, W*r).
    y = y.reshape(n, c_base, r, r, h, w_dim)
    y = jnp.transpose(y, (0, 1, 4, 2, 5, 3)).reshape(n, c_base, h * r, w_dim * r)
    return y


def upsample_block_ref(x, w, b, up_scale):
    """Pure-JAX f32 reference: conv2d(3x3, pad=1) -> PixelShuffle -> mish (NCHW, like PyTorch)."""
    r = up_scale
    y = lax.conv_general_dilated(
        x.astype(jnp.float32), w.astype(jnp.float32),
        window_strides=(1, 1), padding=((1, 1), (1, 1)),
        dimension_numbers=('NCHW', 'OIHW', 'NCHW'))
    y = y + b.astype(jnp.float32)[None, :, None, None]
    n, crr, h, w_dim = y.shape
    c = crr // (r * r)
    y = y.reshape(n, c, r, r, h, w_dim).transpose(0, 1, 4, 2, 5, 3).reshape(
        n, c, h * r, w_dim * r)
    sp = jnp.maximum(y, 0.0) + jnp.log1p(jnp.exp(-jnp.abs(y)))  # stable softplus
    y = y * jnp.tanh(sp)
    return y.astype(x.dtype)


if __name__ == "__main__":
    key = jax.random.PRNGKey(0)
    kx, kw, kb = jax.random.split(key, 3)

    N, Cin, H, W, r = 2, 4, 16, 16, 2
    Cout = Cin * r * r

    x = jax.random.normal(kx, (N, Cin, H, W), dtype=jnp.float32)        # NCHW input
    w = jax.random.normal(kw, (Cout, Cin, 3, 3), dtype=jnp.float32) * 0.1
    b = jax.random.normal(kb, (Cout,), dtype=jnp.float32) * 0.1

    fn = jax.jit(functools.partial(upsample_block_pallas, up_scale=r))
    y = jax.block_until_ready(fn(x, w, b))

    y_ref = upsample_block_ref(x, w, b, r)
    assert y.shape == (N, Cin, H * r, W * r) and y.dtype == x.dtype
    max_err = float(jnp.max(jnp.abs(y - y_ref)))
    # bf16 operand stream + approx-reciprocal mish -> relaxed tolerance vs the f32 reference.
    assert jnp.allclose(y, y_ref, atol=3e-2, rtol=3e-2), max_err
    print("KERNEL_OK")
</pallas_src>

<mosaic_0001>
module attributes {stable_mosaic.version = 11 : i64} {
  func.func @_conv_ps_mish_kernel(%arg0: i32, %arg1: i32, %arg2: memref<1x1x18x18x4xbf16, #tpu.memory_space<vmem>>, %arg3: memref<9x16x4xbf16, #tpu.memory_space<vmem>>, %arg4: memref<16x1xf32, #tpu.memory_space<vmem>>, %arg5: memref<1x16x256xf32, #tpu.memory_space<vmem>>) attributes {dimension_semantics = [#tpu.dimension_semantics<parallel>, #tpu.dimension_semantics<parallel>], iteration_bounds = array<i64: 2, 1>, scalar_prefetch = 0 : i64, scratch_operands = 0 : i64, tpu.core_type = #tpu.core_type<tc>, window_params = [{transform_indices = @transform_0, window_bounds = array<i64: 1, 1, 18, 18, 4>}, {pipeline_mode = #tpu.pipeline_mode<synchronous>, transform_indices = @transform_1, window_bounds = array<i64: 9, 16, 4>}, {pipeline_mode = #tpu.pipeline_mode<synchronous>, transform_indices = @transform_2, window_bounds = array<i64: 16, 1>}, {transform_indices = @transform_3, window_bounds = array<i64: 1, 16, 256>}]} {
    %c0 = arith.constant 0 : index
    %c0_0 = arith.constant 0 : index
    %c0_1 = arith.constant 0 : index
    %c0_2 = arith.constant 0 : index
    %c0_3 = arith.constant 0 : index
    %0 = vector.load %arg2[%c0, %c0_0, %c0_1, %c0_2, %c0_3] : memref<1x1x18x18x4xbf16, #tpu.memory_space<vmem>>, vector<1x1x18x18x4xbf16>
    %1 = vector.shape_cast %0 : vector<1x1x18x18x4xbf16> to vector<18x18x4xbf16>
    %2 = vector.extract_strided_slice %1 {offsets = [0, 0, 0], sizes = [16, 16, 4], strides = [1, 1, 1]} : vector<18x18x4xbf16> to vector<16x16x4xbf16>
    %3 = vector.shape_cast %2 : vector<16x16x4xbf16> to vector<256x4xbf16>
    %c0_4 = arith.constant 0 : index
    %c0_5 = arith.constant 0 : index
    %c0_6 = arith.constant 0 : index
    %4 = vector.load %arg3[%c0_4, %c0_5, %c0_6] : memref<9x16x4xbf16, #tpu.memory_space<vmem>>, vector<1x16x4xbf16>
    %5 = vector.shape_cast %4 : vector<1x16x4xbf16> to vector<16x4xbf16>
    %cst = arith.constant dense<0.000000e+00> : vector<16x256xf32>
    %6 = tpu.matmul %5, %3, %cst {dimension_numbers = #tpu.dot_dimension_numbers<[1], [1], [0], [0], [0, 0, 1, 0], [], []>} : vector<16x4xbf16>, vector<256x4xbf16>, vector<16x256xf32> -> vector<16x256xf32>
    %7 = vector.extract_strided_slice %1 {offsets = [0, 1, 0], sizes = [16, 16, 4], strides = [1, 1, 1]} : vector<18x18x4xbf16> to vector<16x16x4xbf16>
    %8 = vector.shape_cast %7 : vector<16x16x4xbf16> to vector<256x4xbf16>
    %c1 = arith.constant 1 : index
    %c0_7 = arith.constant 0 : index
    %c0_8 = arith.constant 0 : index
    %9 = vector.load %arg3[%c1, %c0_7, %c0_8] : memref<9x16x4xbf16, #tpu.memory_space<vmem>>, vector<1x16x4xbf16>
    %10 = vector.shape_cast %9 : vector<1x16x4xbf16> to vector<16x4xbf16>
    %cst_9 = arith.constant dense<0.000000e+00> : vector<16x256xf32>
    %11 = tpu.matmul %10, %8, %cst_9 {dimension_numbers = #tpu.dot_dimension_numbers<[1], [1], [0], [0], [0, 0, 1, 0], [], []>} : vector<16x4xbf16>, vector<256x4xbf16>, vector<16x256xf32> -> vector<16x256xf32>
    %12 = arith.addf %6, %11 : vector<16x256xf32>
    %13 = vector.extract_strided_slice %1 {offsets = [0, 2, 0], sizes = [16, 16, 4], strides = [1, 1, 1]} : vector<18x18x4xbf16> to vector<16x16x4xbf16>
    %14 = vector.shape_cast %13 : vector<16x16x4xbf16> to vector<256x4xbf16>
    %c2 = arith.constant 2 : index
    %c0_10 = arith.constant 0 : index
    %c0_11 = arith.constant 0 : index
    %15 = vector.load %arg3[%c2, %c0_10, %c0_11] : memref<9x16x4xbf16, #tpu.memory_space<vmem>>, vector<1x16x4xbf16>
    %16 = vector.shape_cast %15 : vector<1x16x4xbf16> to vector<16x4xbf16>
    %cst_12 = arith.constant dense<0.000000e+00> : vector<16x256xf32>
    %17 = tpu.matmul %16, %14, %cst_12 {dimension_numbers = #tpu.dot_dimension_numbers<[1], [1], [0], [0], [0, 0, 1, 0], [], []>} : vector<16x4xbf16>, vector<256x4xbf16>, vector<16x256xf32> -> vector<16x256xf32>
    %18 = arith.addf %12, %17 : vector<16x256xf32>
    %19 = vector.extract_strided_slice %1 {offsets = [1, 0, 0], sizes = [16, 16, 4], strides = [1, 1, 1]} : vector<18x18x4xbf16> to vector<16x16x4xbf16>
    %20 = vector.shape_cast %19 : vector<16x16x4xbf16> to vector<256x4xbf16>
    %c3 = arith.constant 3 : index
    %c0_13 = arith.constant 0 : index
    %c0_14 = arith.constant 0 : index
    %21 = vector.load %arg3[%c3, %c0_13, %c0_14] : memref<9x16x4xbf16, #tpu.memory_space<vmem>>, vector<1x16x4xbf16>
    %22 = vector.shape_cast %21 : vector<1x16x4xbf16> to vector<16x4xbf16>
    %cst_15 = arith.constant dense<0.000000e+00> : vector<16x256xf32>
    %23 = tpu.matmul %22, %20, %cst_15 {dimension_numbers = #tpu.dot_dimension_numbers<[1], [1], [0], [0], [0, 0, 1, 0], [], []>} : vector<16x4xbf16>, vector<256x4xbf16>, vector<16x256xf32> -> vector<16x256xf32>
    %24 = arith.addf %18, %23 : vector<16x256xf32>
    %25 = vector.extract_strided_slice %1 {offsets = [1, 1, 0], sizes = [16, 16, 4], strides = [1, 1, 1]} : vector<18x18x4xbf16> to vector<16x16x4xbf16>
    %26 = vector.shape_cast %25 : vector<16x16x4xbf16> to vector<256x4xbf16>
    %c4 = arith.constant 4 : index
    %c0_16 = arith.constant 0 : index
    %c0_17 = arith.constant 0 : index
    %27 = vector.load %arg3[%c4, %c0_16, %c0_17] : memref<9x16x4xbf16, #tpu.memory_space<vmem>>, vector<1x16x4xbf16>
    %28 = vector.shape_cast %27 : vector<1x16x4xbf16> to vector<16x4xbf16>
    %cst_18 = arith.constant dense<0.000000e+00> : vector<16x256xf32>
    %29 = tpu.matmul %28, %26, %cst_18 {dimension_numbers = #tpu.dot_dimension_numbers<[1], [1], [0], [0], [0, 0, 1, 0], [], []>} : vector<16x4xbf16>, vector<256x4xbf16>, vector<16x256xf32> -> vector<16x256xf32>
    %30 = arith.addf %24, %29 : vector<16x256xf32>
    %31 = vector.extract_strided_slice %1 {offsets = [1, 2, 0], sizes = [16, 16, 4], strides = [1, 1, 1]} : vector<18x18x4xbf16> to vector<16x16x4xbf16>
    %32 = vector.shape_cast %31 : vector<16x16x4xbf16> to vector<256x4xbf16>
    %c5 = arith.constant 5 : index
    %c0_19 = arith.constant 0 : index
    %c0_20 = arith.constant 0 : index
    %33 = vector.load %arg3[%c5, %c0_19, %c0_20] : memref<9x16x4xbf16, #tpu.memory_space<vmem>>, vector<1x16x4xbf16>
    %34 = vector.shape_cast %33 : vector<1x16x4xbf16> to vector<16x4xbf16>
    %cst_21 = arith.constant dense<0.000000e+00> : vector<16x256xf32>
    %35 = tpu.matmul %34, %32, %cst_21 {dimension_numbers = #tpu.dot_dimension_numbers<[1], [1], [0], [0], [0, 0, 1, 0], [], []>} : vector<16x4xbf16>, vector<256x4xbf16>, vector<16x256xf32> -> vector<16x256xf32>
    %36 = arith.addf %30, %35 : vector<16x256xf32>
    %37 = vector.extract_strided_slice %1 {offsets = [2, 0, 0], sizes = [16, 16, 4], strides = [1, 1, 1]} : vector<18x18x4xbf16> to vector<16x16x4xbf16>
    %38 = vector.shape_cast %37 : vector<16x16x4xbf16> to vector<256x4xbf16>
    %c6 = arith.constant 6 : index
    %c0_22 = arith.constant 0 : index
    %c0_23 = arith.constant 0 : index
    %39 = vector.load %arg3[%c6, %c0_22, %c0_23] : memref<9x16x4xbf16, #tpu.memory_space<vmem>>, vector<1x16x4xbf16>
    %40 = vector.shape_cast %39 : vector<1x16x4xbf16> to vector<16x4xbf16>
    %cst_24 = arith.constant dense<0.000000e+00> : vector<16x256xf32>
    %41 = tpu.matmul %40, %38, %cst_24 {dimension_numbers = #tpu.dot_dimension_numbers<[1], [1], [0], [0], [0, 0, 1, 0], [], []>} : vector<16x4xbf16>, vector<256x4xbf16>, vector<16x256xf32> -> vector<16x256xf32>
    %42 = arith.addf %36, %41 : vector<16x256xf32>
    %43 = vector.extract_strided_slice %1 {offsets = [2, 1, 0], sizes = [16, 16, 4], strides = [1, 1, 1]} : vector<18x18x4xbf16> to vector<16x16x4xbf16>
    %44 = vector.shape_cast %43 : vector<16x16x4xbf16> to vector<256x4xbf16>
    %c7 = arith.constant 7 : index
    %c0_25 = arith.constant 0 : index
    %c0_26 = arith.constant 0 : index
    %45 = vector.load %arg3[%c7, %c0_25, %c0_26] : memref<9x16x4xbf16, #tpu.memory_space<vmem>>, vector<1x16x4xbf16>
    %46 = vector.shape_cast %45 : vector<1x16x4xbf16> to vector<16x4xbf16>
    %cst_27 = arith.constant dense<0.000000e+00> : vector<16x256xf32>
    %47 = tpu.matmul %46, %44, %cst_27 {dimension_numbers = #tpu.dot_dimension_numbers<[1], [1], [0], [0], [0, 0, 1, 0], [], []>} : vector<16x4xbf16>, vector<256x4xbf16>, vector<16x256xf32> -> vector<16x256xf32>
    %48 = arith.addf %42, %47 : vector<16x256xf32>
    %49 = vector.extract_strided_slice %1 {offsets = [2, 2, 0], sizes = [16, 16, 4], strides = [1, 1, 1]} : vector<18x18x4xbf16> to vector<16x16x4xbf16>
    %50 = vector.shape_cast %49 : vector<16x16x4xbf16> to vector<256x4xbf16>
    %c8 = arith.constant 8 : index
    %c0_28 = arith.constant 0 : index
    %c0_29 = arith.constant 0 : index
    %51 = vector.load %arg3[%c8, %c0_28, %c0_29] : memref<9x16x4xbf16, #tpu.memory_space<vmem>>, vector<1x16x4xbf16>
    %52 = vector.shape_cast %51 : vector<1x16x4xbf16> to vector<16x4xbf16>
    %cst_30 = arith.constant dense<0.000000e+00> : vector<16x256xf32>
    %53 = tpu.matmul %52, %50, %cst_30 {dimension_numbers = #tpu.dot_dimension_numbers<[1], [1], [0], [0], [0, 0, 1, 0], [], []>} : vector<16x4xbf16>, vector<256x4xbf16>, vector<16x256xf32> -> vector<16x256xf32>
    %54 = arith.addf %48, %53 : vector<16x256xf32>
    %c0_31 = arith.constant 0 : index
    %c0_32 = arith.constant 0 : index
    %55 = vector.load %arg4[%c0_31, %c0_32] : memref<16x1xf32, #tpu.memory_space<vmem>>, vector<16x1xf32>
    %56 = vector.broadcast %55 : vector<16x1xf32> to vector<16x256xf32>
    %57 = arith.addf %54, %56 : vector<16x256xf32>
    %58 = math.absf %57 : vector<16x256xf32>
    %cst_33 = arith.constant 0.000000e+00 : f32
    %59 = vector.broadcast %cst_33 : f32 to vector<16x256xf32>
    %60 = arith.subf %59, %58 : vector<16x256xf32>
    %61 = math.exp %60 : vector<16x256xf32>
    %62 = arith.mulf %61, %61 : vector<16x256xf32>
    %cst_34 = arith.constant 0.000000e+00 : f32
    %63 = vector.broadcast %cst_34 : f32 to vector<16x256xf32>
    %64 = arith.cmpf oge, %57, %63 : vector<16x256xf32>
    %cst_35 = arith.constant 2.000000e+00 : f32
    %65 = vector.broadcast %cst_35 : f32 to vector<16x256xf32>
    %66 = arith.mulf %65, %61 : vector<16x256xf32>
    %cst_36 = arith.constant 1.000000e+00 : f32
    %67 = vector.broadcast %cst_36 : f32 to vector<16x256xf32>
    %68 = arith.addf %67, %66 : vector<16x256xf32>
    %cst_37 = arith.constant 2.000000e+00 : f32
    %69 = vector.broadcast %cst_37 : f32 to vector<16x256xf32>
    %70 = arith.mulf %69, %61 : vector<16x256xf32>
    %71 = arith.addf %70, %62 : vector<16x256xf32>
    %72 = arith.select %64, %68, %71 : vector<16x256xi1>, vector<16x256xf32>
    %cst_38 = arith.constant 2.000000e+00 : f32
    %73 = vector.broadcast %cst_38 : f32 to vector<16x256xf32>
    %74 = arith.mulf %73, %61 : vector<16x256xf32>
    %cst_39 = arith.constant 1.000000e+00 : f32
    %75 = vector.broadcast %cst_39 : f32 to vector<16x256xf32>
    %76 = arith.addf %75, %74 : vector<16x256xf32>
    %cst_40 = arith.constant 2.000000e+00 : f32
    %77 = vector.broadcast %cst_40 : f32 to vector<16x256xf32>
    %78 = arith.mulf %77, %62 : vector<16x256xf32>
    %79 = arith.addf %76, %78 : vector<16x256xf32>
    %cst_41 = arith.constant 2.000000e+00 : f32
    %80 = vector.broadcast %cst_41 : f32 to vector<16x256xf32>
    %81 = arith.mulf %80, %61 : vector<16x256xf32>
    %cst_42 = arith.constant 2.000000e+00 : f32
    %82 = vector.broadcast %cst_42 : f32 to vector<16x256xf32>
    %83 = arith.addf %82, %81 : vector<16x256xf32>
    %84 = arith.addf %83, %62 : vector<16x256xf32>
    %85 = arith.select %64, %79, %84 : vector<16x256xi1>, vector<16x256xf32>
    %86 = tpu.reciprocal %85 {approx = true} : vector<16x256xf32> -> vector<16x256xf32>
    %87 = arith.mulf %72, %86 : vector<16x256xf32>
    %88 = arith.mulf %57, %87 : vector<16x256xf32>
    %c0_43 = arith.constant 0 : index
    %c0_44 = arith.constant 0 : index
    %c0_45 = arith.constant 0 : index
    %89 = vector.load %arg5[%c0_43, %c0_44, %c0_45] : memref<1x16x256xf32, #tpu.memory_space<vmem>>, vector<1x16x256xf32>
    %90 = vector.shape_cast %89 : vector<1x16x256xf32> to vector<16x256xf32>
    %91 = vector.shape_cast %88 : vector<16x256xf32> to vector<1x16x256xf32>
    tpu.vector_store %arg5[%c0_43, %c0_44, %c0_45], %91 {strides = array<i32>} : memref<1x16x256xf32, #tpu.memory_space<vmem>>, vector<1x16x256xf32>,
    return
  }
  func.func @transform_0(%arg0: i32, %arg1: i32) -> (i32, i32, i32, i32, i32) {
    %c0_i32 = arith.constant 0 : i32
    %c0_i32_0 = arith.constant 0 : i32
    %c0_i32_1 = arith.constant 0 : i32
    %c0_i32_2 = arith.constant 0 : i32
    return %arg0, %arg1, %c0_i32, %c0_i32_0, %c0_i32_1 : i32, i32, i32, i32, i32
  }
  func.func @transform_1(%arg0: i32, %arg1: i32) -> (i32, i32, i32) {
    %c0_i32 = arith.constant 0 : i32
    %c0_i32_0 = arith.constant 0 : i32
    %c0_i32_1 = arith.constant 0 : i32
    %c0_i32_2 = arith.constant 0 : i32
    return %c0_i32, %c0_i32_0, %c0_i32_1 : i32, i32, i32
  }
  func.func @transform_2(%arg0: i32, %arg1: i32) -> (i32, i32) {
    %c0_i32 = arith.constant 0 : i32
    %c0_i32_0 = arith.constant 0 : i32
    %c0_i32_1 = arith.constant 0 : i32
    return %c0_i32, %c0_i32_0 : i32, i32
  }
  func.func @transform_3(%arg0: i32, %arg1: i32) -> (i32, i32, i32) {
    %c0_i32 = arith.constant 0 : i32
    %c0_i32_0 = arith.constant 0 : i32
    return %arg0, %c0_i32, %arg1 : i32, i32, i32
  }
}

</mosaic_0001>

<bundles_post_ra>
// kernel: upsample_block_pallas.1
= control target key start
LH: loop header
LB: loop body
LE: loop exit
PB: predicated region body
PF: predicated region fallthrough
CT: control target
= control target key end

     0   :  { %s2367_s12 = smov 0   ;;  %s2369_s13 = smov 0   ;;  %s3364_s0 = inlined_call_operand.vmem [shape: bf16[2,1,18,18,4], index: 0, kind: input, shape index: {}]   ;;  %s3365_s1 = inlined_call_operand.vmem [shape: bf16[9,16,4], index: 1, kind: input, shape index: {}]   ;;  %s3366_s2 = inlined_call_operand.vmem [shape: f32[16,1], index: 2, kind: input, shape index: {}]   ;;  %s3367_s3 = inlined_call_operand.vmem [shape: f32[2,16,256], index: 3, kind: output, shape index: {}]  }
   0x1   :  { %s2371_s14 = smov 0  }
   0x2 LB: > { %s25_s15 = sadd.s32 1, %s2340_s13  ;;  %p1905_p0 = scmp.ge.s32.totalorder %s2344_s14, 1  ;;  %s2344_s14 = sphi %s2371_s14, %s13_s14   ;;  %s2340_s13 = sphi %s2369_s13, %s3512_s13   ;;  %s2336_s12 = sphi %s2367_s12, %s3511_s12  }
   0x3   : > { %p27_p1 = scmp.ge.s32.totalorder %s25_s15, 2  ;;  %p157_p2 = scmp.lt.s32.totalorder %s2344_s14, 3 }
   0x5   : > { %s3514_s15 = smov (%p27_p1, %s25_s15), 0  ;;  %p158_p3 = pnand %p1905_p0, %p157_p2 }
   0x7   : > { %161 = sbr.rel (%p158_p3) target bundleno = 614 (0x266), region = 32 }
   0xc   : > { %p189_p4 = scmp.lt.s32.totalorder %s2336_s12, 1  ;;  %vm265_vm0 = vsmask.f32 3328  ;;  %v2390_v0 = vld [vmem:[%s3365_s1 + $0x8] sm:$0xff]   ;;  %vm266_vm1 = vsmask.f32 7440 }
   0xd   : > { %vm708_vm2 = vcmask 31744   ;;  %v2395_v1 = vld [vmem:[%s3365_s1] sm:$0xff]   ;;  %vm2447_vm3 = vmor %vm265_vm0, %vm266_vm1  ;;  %vm998_vm4 = vcmask 1042432   ;;  %vm999_vm5 = vcmask 1046532   ;;  %v2304_v28 = vld [vmem:[%s3365_s1 + $0x38] sm:$0xff]  }
   0xe   : > { %s3516_s12 = smov (!%p189_p4, %s2336_s12), 1  ;;  %2034 = vmatprep.mubr.msk.bf16.mxu0 %vm708_vm2, %v2390_v0  ;;  %2052 = vmatprep.mubr.msk.bf16.mxu1 %vm708_vm2, %v2395_v1  ;;  %vm2843_vm6 = vmor %vm998_vm4, %vm999_vm5 }
   0xf   : > { %s2252_s20 = smul.u32 216, %s3516_s12  ;;  %s2017_s19 = sshll.u32 %s3516_s12, 5 }
  0x10   : > { %s206_s22 = scalar_lea.vmem %s3367_s3, %s2017_s19 }
  0x11   : > { %s2405_s23 = scalar_lea.vmem %s3364_s0, %s2252_s20 }
  0x12   : > { %v2408_v2 = vld [vmem:[%s2405_s23 + $0xb4] sm:$0xf]  ;;  %v2411_v3 = vld [vmem:[%s2405_s23 + $0xb8] sm:$0xf]  ;;  %v2414_v4 = vld [vmem:[%s2405_s23 + $0xbc] sm:$0x1] }
  0x13   : > { %v629_v5 = vshrl.u32 %v2408_v2, 16  ;;  %v632_v6 = vshll.u32 %v2408_v2, 16  ;;  %v638_v7 = vshll.u32 %v2411_v3, 16  ;;  %v642_v8 = vshrl.u32 %v2411_v3, 16  ;;  %v2421_v9 = vld [vmem:[%s2405_s23 + $0x54] sm:$0xf] }
  0x14   : > { %v648_v10 = vshll.u32 %v2414_v4, 16  ;;  %v2427_v12 = vcombine.low %v2408_v2, %v2411_v3  ;;  %v2430_v13 = vld [vmem:[%s2405_s23 + $0x58] sm:$0xf]  ;;  %v2433_v14 = vld [vmem:[%s2405_s23 + $0x5c] sm:$0x1]  ;;  %v437_v20 = vshrl.u32 %v2421_v9, 16 }
  0x15   : > { %v631_v15 = vrot.slane %v629_v5, 4  ;;  %v634_v16 = vrot.slane %v632_v6, 5  ;;  %v640_v17 = vrot.slane %v638_v7, 5  ;;  %v644_v18 = vrot.slane %v642_v8, 4  ;;  %v2443_v27 = vld [vmem:[%s2405_s23 + $0xa8] sm:$0xf] }
  0x16   : > { %v650_v19 = vrot.slane %v648_v10, 5  ;;  %2188 = vmatprep.subr.msk.bf16.mxu1 %vm708_vm2, %v2427_v12  ;;  %v440_v21 = vshll.u32 %v2421_v9, 16  ;;  %v446_v22 = vshll.u32 %v2430_v13, 16  ;;  %v450_v25 = vshrl.u32 %v2430_v13, 16  ;;  %v2454_v33 = vld [vmem:[%s2405_s23 + $0xac] sm:$0xf] }
  0x17   : > { %v635_v23 = vor.u32 %v634_v16, %v631_v15  ;;  %v645_v24 = vor.u32 %v644_v18, %v640_v17  ;;  %v456_v26 = vshll.u32 %v2433_v14, 16  ;;  %v439_v29 = vrot.slane %v437_v20, 4  ;;  %v2460_v40 = vld [vmem:[%s2405_s23 + $0xb0] sm:$0x1]  ;;  %v2471_v47 = vld [vmem:[%s2405_s23 + $0x48] sm:$0xf] }
  0x18   : > { %v442_v30 = vrot.slane %v440_v21, 5  ;;  %v448_v31 = vrot.slane %v446_v22, 5  ;;  %v1937_v32 = vcombine.low %v2421_v9, %v2430_v13  ;;  %v452_v36 = vrot.slane %v450_v25, 4  ;;  %v2478_v56 = vld [vmem:[%s2405_s23 + $0x4c] sm:$0xf] }
  0x19   : > { %v636_v34 = vrot.slane %v635_v23, 4  ;;  %v646_v35 = vrot.slane %v645_v24, 4  ;;  %v458_v37 = vrot.slane %v456_v26, 5  ;;  %v605_v41 = vshrl.u32 %v2443_v27, 16  ;;  %v2489_v60 = vld [vmem:[%s2405_s23 + $0x50] sm:$0x1] }
  0x1a   : > { %v443_v38 = vor.u32 %v442_v30, %v439_v29  ;;  %v2457_v39 = vsel %vm708_vm2, %v1937_v32, 0  ;;  %v608_v42 = vshll.u32 %v2443_v27, 16  ;;  %v453_v45 = vor.u32 %v452_v36, %v448_v31  ;;  %v2499_v16 = vld [vmem:[%s2405_s23 + $0x9c] sm:$0xf]  ;;  %v2504_v21 = vld [vmem:[%s2405_s23 + $0xa0] sm:$0xf] }
  0x1b   : > { %v641_v43 = vsel %vm2447_vm3, %v636_v34, %v640_v17  ;;  %v651_v44 = vsel %vm2447_vm3, %v646_v35, %v650_v19  ;;  %2037 = vmatpush3.bf16.xpose.msra.mxu1 %v2457_v39  ;;  %v614_v46 = vshll.u32 %v2454_v33, 16  ;;  %v607_v50 = vrot.slane %v605_v41, 4  ;;  %v2518_v34 = vld [vmem:[%s2405_s23 + $0xa4] sm:$0x1] }
  0x1c   : > { %v2473_v48 = vcombine.low %v641_v43, %v651_v44  ;;  %v444_v49 = vrot.slane %v443_v38, 4  ;;  %v610_v51 = vrot.slane %v608_v42, 5  ;;  %v454_v52 = vrot.slane %v453_v45, 4  ;;  %v2528_v44 = vld [vmem:[%s2405_s23 + $0x3c] sm:$0xf] }
  0x1d   : > { %v616_v53 = vrot.slane %v614_v46, 5  ;;  %v618_v54 = vshrl.u32 %v2454_v33, 16  ;;  %v624_v55 = vshll.u32 %v2460_v40, 16  ;;  %v2486_v59 = vcombine.low %v2443_v27, %v2454_v33 }
  0x1e   : > { %3431 = vst [vmem:[#allocation2_spill] sm:$0xff] %v2473_v48  ;;  %2180 = vmatprep.subr.msk.bf16.mxu0 %vm708_vm2, %v2473_v48  ;;  %v449_v57 = vsel %vm2447_vm3, %v444_v49, %v448_v31  ;;  %v611_v58 = vor.u32 %v610_v51, %v607_v50  ;;  %v413_v61 = vshrl.u32 %v2471_v47, 16  ;;  %v459_v62 = vsel %vm2447_vm3, %v454_v52, %v458_v37  ;;  %v2533_v51 = vld [vmem:[%s2405_s23 + $0x40] sm:$0xf] }
  0x1f   : > { %v620_v63 = vrot.slane %v618_v54, 4  ;;  %v626_v5 = vrot.slane %v624_v55, 5  ;;  %v416_v6 = vshll.u32 %v2471_v47, 16  ;;  %v1919_v7 = vcombine.low %v449_v57, %v459_v62  ;;  %2189 = vmatprep.subr.msk.bf16.mxu1 %vm708_vm2, %v2486_v59 }
  0x20   : > { %v612_v8 = vrot.slane %v611_v58, 4  ;;  %v415_v10 = vrot.slane %v413_v61, 4  ;;  %v422_v15 = vshll.u32 %v2478_v56, 16  ;;  %v426_v19 = vshrl.u32 %v2478_v56, 16  ;;  %v2545_v61 = vld [vmem:[%s2405_s23 + $0x44] sm:$0x1] }
  0x21   : > { %v621_v17 = vor.u32 %v620_v63, %v616_v53  ;;  %v418_v18 = vrot.slane %v416_v6, 5  ;;  %v432_v20 = vshll.u32 %v2489_v60, 16  ;;  %v2507_v22 = vsel %vm708_vm2, %v1919_v7, 0 }
  0x22   : > { %3432 = vst [vmem:[#allocation3_spill] sm:$0xff] %v2507_v22  ;;  %v617_v23 = vsel %vm2447_vm3, %v612_v8, %v616_v53  ;;  %v424_v24 = vrot.slane %v422_v15, 5  ;;  %v1936_v25 = vcombine.low %v2471_v47, %v2478_v56  ;;  %2019 = vmatpush3.bf16.xpose.msra.mxu0 %v2507_v22  ;;  %v428_v30 = vrot.slane %v426_v19, 4  ;;  %v2555_v19 = vld [vmem:[%s2405_s23 + $0x90] sm:$0xf] }
  0x23   : > { %v622_v26 = vrot.slane %v621_v17, 4  ;;  %v419_v29 = vor.u32 %v418_v18, %v415_v10  ;;  %v434_v31 = vrot.slane %v432_v20, 5  ;;  %v581_v35 = vshrl.u32 %v2499_v16, 16 }
  0x24   : > { %v2515_v32 = vsel %vm708_vm2, %v1936_v25, 0  ;;  %v584_v36 = vshll.u32 %v2499_v16, 16  ;;  %v590_v37 = vshll.u32 %v2504_v21, 16  ;;  %v429_v42 = vor.u32 %v428_v30, %v424_v24 }
  0x25   : > { %3433 = vst [vmem:[#allocation4_spill] sm:$0xff] %v2515_v32  ;;  %v627_v38 = vsel %vm2447_vm3, %v622_v26, %v626_v5  ;;  %v420_v41 = vrot.slane %v419_v29, 4  ;;  %2039 = vmatpush3.bf16.xpose.msra.mxu1 %v2515_v32  ;;  %v594_v43 = vshrl.u32 %v2504_v21, 16  ;;  %v583_v46 = vrot.slane %v581_v35, 4  ;;  %v2567_v35 = vld [vmem:[%s2405_s23 + $0x94] sm:$0xf] }
  0x26   : > { %v2530_v45 = vcombine.low %v617_v23, %v627_v38  ;;  %v586_v49 = vrot.slane %v584_v36, 5  ;;  %v592_v50 = vrot.slane %v590_v37, 5  ;;  %v430_v53 = vrot.slane %v429_v42, 4 }
  0x27   : > { %v425_v52 = vsel %vm2447_vm3, %v420_v41, %v424_v24  ;;  %v596_v54 = vrot.slane %v594_v43, 4  ;;  %v600_v55 = vshll.u32 %v2518_v34, 16  ;;  %v2542_v58 = vcombine.low %v2499_v16, %v2504_v21  ;;  %v2573_v41 = vld [vmem:[%s2405_s23 + $0x98] sm:$0x1] }
  0x28   : > { %3434 = vst [vmem:[#allocation5_spill] sm:$0xff] %v2530_v45  ;;  %2181 = vmatprep.subr.msk.bf16.mxu0 %vm708_vm2, %v2530_v45  ;;  %v587_v57 = vor.u32 %v586_v49, %v583_v46  ;;  %v389_v62 = vshrl.u32 %v2528_v44, 16  ;;  %v392_v63 = vshll.u32 %v2528_v44, 16  ;;  %v435_v5 = vsel %vm2447_vm3, %v430_v53, %v434_v31 }
  0x29   : > { %3435 = vst [vmem:[#allocation6_spill] sm:$0xff] %v2542_v58  ;;  %v597_v6 = vor.u32 %v596_v54, %v592_v50  ;;  %v602_v7 = vrot.slane %v600_v55, 5  ;;  %v398_v8 = vshll.u32 %v2533_v51, 16  ;;  %v1918_v10 = vcombine.low %v425_v52, %v435_v5  ;;  %2190 = vmatprep.subr.msk.bf16.mxu1 %vm708_vm2, %v2542_v58  ;;  %v2583_v52 = vld [vmem:[%s2405_s23 + $0x30] sm:$0xf] }
  0x2a   : > { %v588_v15 = vrot.slane %v587_v57, 4  ;;  %v391_v17 = vrot.slane %v389_v62, 4  ;;  %v394_v18 = vrot.slane %v392_v63, 5  ;;  %v402_v24 = vshrl.u32 %v2533_v51, 16  ;;  %v2589_v62 = vld [vmem:[%s2405_s23 + $0x34] sm:$0xf] }
  0x2b   : > { %v598_v20 = vrot.slane %v597_v6, 4  ;;  %v400_v23 = vrot.slane %v398_v8, 5  ;;  %v408_v25 = vshll.u32 %v2545_v61, 16  ;;  %v2560_v26 = vsel %vm708_vm2, %v1918_v10, 0 }
  0x2c   : > { %3436 = vst [vmem:[#allocation7_spill] sm:$0xff] %v2560_v26  ;;  %v593_v29 = vsel %vm2447_vm3, %v588_v15, %v592_v50  ;;  %v395_v30 = vor.u32 %v394_v18, %v391_v17  ;;  %v1935_v31 = vcombine.low %v2528_v44, %v2533_v51  ;;  %2021 = vmatpush3.bf16.xpose.msra.mxu0 %v2560_v26  ;;  %v404_v37 = vrot.slane %v402_v24, 4  ;;  %v2604_v24 = vld [vmem:[%s2405_s23 + $0x38] sm:$0x1] }
  0x2d   : > { %v603_v36 = vsel %vm2447_vm3, %v598_v20, %v602_v7  ;;  %v410_v38 = vrot.slane %v408_v25, 5  ;;  %v557_v42 = vshrl.u32 %v2555_v19, 16  ;;  %v560_v50 = vshll.u32 %v2555_v19, 16 }
  0x2e   : > { %v2576_v43 = vcombine.low %v593_v29, %v603_v36  ;;  %v396_v46 = vrot.slane %v395_v30, 4  ;;  %v2579_v49 = vsel %vm708_vm2, %v1935_v31, 0  ;;  %v405_v53 = vor.u32 %v404_v37, %v400_v23  ;;  %v2612_v37 = vld [vmem:[%s2405_s23 + $0x84] sm:$0xf] }
  0x2f   : > { %3438 = vst [vmem:[#allocation9_spill] sm:$0xff] %v2579_v49  ;;  %2041 = vmatpush3.bf16.xpose.msra.mxu1 %v2579_v49  ;;  %v559_v54 = vrot.slane %v557_v42, 4  ;;  %v566_v55 = vshll.u32 %v2567_v35, 16  ;;  %v570_v57 = vshrl.u32 %v2567_v35, 16  ;;  %v562_v5 = vrot.slane %v560_v50, 5 }
  0x30   : > { %3437 = vst [vmem:[#allocation8_spill] sm:$0xff] %v2576_v43  ;;  %2182 = vmatprep.subr.msk.bf16.mxu0 %vm708_vm2, %v2576_v43  ;;  %v401_v63 = vsel %vm2447_vm3, %v396_v46, %v400_v23  ;;  %v576_v6 = vshll.u32 %v2573_v41, 16  ;;  %v2598_v7 = vcombine.low %v2555_v19, %v2567_v35  ;;  %v406_v8 = vrot.slane %v405_v53, 4 }
  0x31   : > { %v568_v10 = vrot.slane %v566_v55, 5  ;;  %v572_v15 = vrot.slane %v570_v57, 4  ;;  %v365_v17 = vshrl.u32 %v2583_v52, 16  ;;  %v563_v18 = vor.u32 %v562_v5, %v559_v54 }
  0x32   : > { %3439 = vst [vmem:[#allocation10_spill] sm:$0xff] %v2598_v7  ;;  %v578_v20 = vrot.slane %v576_v6, 5  ;;  %2191 = vmatprep.subr.msk.bf16.mxu1 %vm708_vm2, %v2598_v7  ;;  %v368_v23 = vshll.u32 %v2583_v52, 16  ;;  %v374_v25 = vshll.u32 %v2589_v62, 16  ;;  %v411_v29 = vsel %vm2447_vm3, %v406_v8, %v410_v38  ;;  %v2618_v38 = vld [vmem:[%s2405_s23 + $0x88] sm:$0xf] }
  0x33   : > { %v573_v30 = vor.u32 %v572_v15, %v568_v10  ;;  %v367_v31 = vrot.slane %v365_v17, 4  ;;  %v378_v36 = vshrl.u32 %v2589_v62, 16  ;;  %v1917_v42 = vcombine.low %v401_v63, %v411_v29  ;;  %v2626_v15 = vld [vmem:[%s2405_s23 + $0x8c] sm:$0x1] }
  0x34   : > { %v564_v46 = vrot.slane %v563_v18, 4  ;;  %v370_v50 = vrot.slane %v368_v23, 5  ;;  %v376_v53 = vrot.slane %v374_v25, 5  ;;  %v384_v57 = vshll.u32 %v2604_v24, 16  ;;  %v2630_v18 = vld [vmem:[%s2405_s23 + $0x24] sm:$0xf] }
  0x35   : > { %v574_v54 = vrot.slane %v573_v30, 4  ;;  %v380_v55 = vrot.slane %v378_v36, 4  ;;  %v1934_v5 = vcombine.low %v2583_v52, %v2589_v62  ;;  %v2621_v6 = vsel %vm708_vm2, %v1917_v42, 0 }
  0x36   : > { %3440 = vst [vmem:[#allocation11_spill] sm:$0xff] %v2621_v6  ;;  %v569_v8 = vsel %vm2447_vm3, %v564_v46, %v568_v10  ;;  %v371_v63 = vor.u32 %v370_v50, %v367_v31  ;;  %v533_v17 = vshrl.u32 %v2612_v37, 16  ;;  %2023 = vmatpush3.bf16.xpose.msra.mxu0 %v2621_v6  ;;  %v386_v29 = vrot.slane %v384_v57, 5  ;;  %v2643_v46 = vld [vmem:[%s2405_s23 + $0x28] sm:$0xf] }
  0x37   : > { %v579_v23 = vsel %vm2447_vm3, %v574_v54, %v578_v20  ;;  %v381_v25 = vor.u32 %v380_v55, %v376_v53  ;;  %v2636_v30 = vsel %vm708_vm2, %v1934_v5, 0  ;;  %v536_v42 = vshll.u32 %v2612_v37, 16 }
  0x38   : > { %3441 = vst [vmem:[#allocation12_spill] sm:$0xff] %v2636_v30  ;;  %v2638_v36 = vcombine.low %v569_v8, %v579_v23  ;;  %v372_v10 = vrot.slane %v371_v63, 4  ;;  %2043 = vmatpush3.bf16.xpose.msra.mxu1 %v2636_v30  ;;  %v535_v31 = vrot.slane %v533_v17, 4  ;;  %v542_v11 = vshll.u32 %v2618_v38, 16  ;;  %v2657_v8 = vld [vmem:[%s2405_s23 + $0x2c] sm:$0x1] }
  0x39   : > { %v382_v50 = vrot.slane %v381_v25, 4  ;;  %v546_v20 = vshrl.u32 %v2618_v38, 16  ;;  %v552_v54 = vshll.u32 %v2626_v15, 16  ;;  %v538_v57 = vrot.slane %v536_v42, 5 }
  0x3a   : > { %3442 = vst [vmem:[#allocation13_spill] sm:$0xff] %v2638_v36  ;;  %2183 = vmatprep.subr.msk.bf16.mxu0 %vm708_vm2, %v2638_v36  ;;  %v377_v55 = vsel %vm2447_vm3, %v372_v10, %v376_v53  ;;  %v2654_v5 = vcombine.low %v2612_v37, %v2618_v38  ;;  %v341_v63 = vshrl.u32 %v2630_v18, 16  ;;  %v544_v23 = vrot.slane %v542_v11, 5  ;;  %v2669_v11 = vld [vmem:[%s2405_s23 + $0x78] sm:$0xf] }
  0x3b   : > { %v387_v17 = vsel %vm2447_vm3, %v382_v50, %v386_v29  ;;  %v548_v25 = vrot.slane %v546_v20, 4  ;;  %v554_v36 = vrot.slane %v552_v54, 5  ;;  %v539_v43 = vor.u32 %v538_v57, %v535_v31 }
  0x3c   : > { %3443 = vst [vmem:[#allocation14_spill] sm:$0xff] %v2654_v5  ;;  %v1916_v6 = vcombine.low %v377_v55, %v387_v17  ;;  %2192 = vmatprep.subr.msk.bf16.mxu1 %vm708_vm2, %v2654_v5  ;;  %v343_v53 = vrot.slane %v341_v63, 4  ;;  %v344_v10 = vshll.u32 %v2630_v18, 16  ;;  %v350_v26 = vshll.u32 %v2643_v46, 16  ;;  %v2677_v55 = vld [vmem:[%s2405_s23 + $0x7c] sm:$0xf] }
  0x3d   : > { %v549_v42 = vor.u32 %v548_v25, %v544_v23  ;;  %v354_v45 = vshrl.u32 %v2643_v46, 16  ;;  %v360_v29 = vshll.u32 %v2657_v8, 16  ;;  %v540_v31 = vrot.slane %v539_v43, 4  ;;  %v2686_v43 = vld [vmem:[%s2405_s23 + $0x80] sm:$0x1] }
  0x3e   : > { %v2672_v50 = vsel %vm708_vm2, %v1916_v6, 0  ;;  %v346_v20 = vrot.slane %v344_v10, 5  ;;  %v1933_v54 = vcombine.low %v2630_v18, %v2643_v46  ;;  %v352_v63 = vrot.slane %v350_v26, 5 }
  0x3f   : > { %3444 = vst [vmem:[#allocation15_spill] sm:$0xff] %v2672_v50  ;;  %2025 = vmatpush3.bf16.xpose.msra.mxu0 %v2672_v50  ;;  %v550_v57 = vrot.slane %v549_v42, 4  ;;  %v356_v17 = vrot.slane %v354_v45, 4  ;;  %v362_v25 = vrot.slane %v360_v29, 5  ;;  %v545_v22 = vsel %vm2447_vm3, %v540_v31, %v544_v23  ;;  %v2695_v23 = vld [vmem:[%s2405_s23 + $0x18] sm:$0xf] }
  0x40   : > { %v347_v48 = vor.u32 %v346_v20, %v343_v53  ;;  %v2683_v6 = vsel %vm708_vm2, %v1933_v54, 0  ;;  %v509_v10 = vshrl.u32 %v2669_v11, 16  ;;  %v512_v45 = vshll.u32 %v2669_v11, 16 }
  0x41   : > { %3445 = vst [vmem:[#allocation16_spill] sm:$0xff] %v2683_v6  ;;  %v555_v5 = vsel %vm2447_vm3, %v550_v57, %v554_v36  ;;  %v357_v50 = vor.u32 %v356_v17, %v352_v63  ;;  %2045 = vmatpush3.bf16.xpose.msra.mxu1 %v2683_v6  ;;  %v518_v26 = vshll.u32 %v2677_v55, 16  ;;  %v522_v31 = vshrl.u32 %v2677_v55, 16  ;;  %v2702_v57 = vld [vmem:[%s2405_s23 + $0x1c] sm:$0xf] }
  0x42   : > { %v2697_v53 = vcombine.low %v545_v22, %v555_v5  ;;  %v348_v42 = vrot.slane %v347_v48, 4  ;;  %v511_v29 = vrot.slane %v509_v10, 4  ;;  %v514_v54 = vrot.slane %v512_v45, 5  ;;  %3447 = vst [vmem:[#allocation18_spill] sm:$0xff] %v2702_v57  ;;  %v2713_v22 = vld [vmem:[%s2405_s23 + $0x20] sm:$0x1] }
  0x43   : > { %v358_v20 = vrot.slane %v357_v50, 4  ;;  %v520_v30 = vrot.slane %v518_v26, 5  ;;  %v528_v36 = vshll.u32 %v2686_v43, 16  ;;  %v524_v6 = vrot.slane %v522_v31, 4  ;;  %3449 = vst [vmem:[#allocation20_spill] sm:$0xff] %v2713_v22 }
  0x44   : > { %3446 = vst [vmem:[#allocation17_spill] sm:$0xff] %v2697_v53  ;;  %2184 = vmatprep.subr.msk.bf16.mxu0 %vm708_vm2, %v2697_v53  ;;  %v353_v17 = vsel %vm2447_vm3, %v348_v42, %v352_v63  ;;  %v2710_v48 = vcombine.low %v2669_v11, %v2677_v55  ;;  %v317_v5 = vshrl.u32 %v2695_v23, 16  ;;  %v515_v10 = vor.u32 %v514_v54, %v511_v29  ;;  %v2725_v29 = vld [vmem:[%s2405_s23 + $0x6c] sm:$0xf] }
  0x45   : > { %v363_v50 = vsel %vm2447_vm3, %v358_v20, %v362_v25  ;;  %v530_v45 = vrot.slane %v528_v36, 5  ;;  %v320_v26 = vshll.u32 %v2695_v23, 16  ;;  %v525_v63 = vor.u32 %v524_v6, %v520_v30  ;;  %3450 = vst [vmem:[#allocation21_spill] sm:$0xff] %v2725_v29 }
  0x46   : > { %3448 = vst [vmem:[#allocation19_spill] sm:$0xff] %v2710_v48  ;;  %v1915_v53 = vcombine.low %v353_v17, %v363_v50  ;;  %2193 = vmatprep.subr.msk.bf16.mxu1 %vm708_vm2, %v2710_v48  ;;  %v319_v42 = vrot.slane %v317_v5, 4  ;;  %v326_v31 = vshll.u32 %v2702_v57, 16  ;;  %v516_v7 = vrot.slane %v515_v10, 4  ;;  %v2733_v17 = vld [vmem:[%s2405_s23 + $0x70] sm:$0xf] }
  0x47   : > { %v322_v49 = vrot.slane %v320_v26, 5  ;;  %v330_v58 = vshrl.u32 %v2702_v57, 16  ;;  %v336_v25 = vshll.u32 %v2713_v22, 16  ;;  %v526_v54 = vrot.slane %v525_v63, 4  ;;  %3452 = vst [vmem:[#allocation23_spill] sm:$0xff] %v2733_v17 }
  0x48   : > { %v2728_v20 = vsel %vm708_vm2, %v1915_v53, 0  ;;  %v328_v6 = vrot.slane %v326_v31, 5  ;;  %v1932_v36 = vcombine.low %v2695_v23, %v2702_v57  ;;  %v521_v5 = vsel %vm2447_vm3, %v516_v7, %v520_v30  ;;  %v2739_v48 = vld [vmem:[%s2405_s23 + $0x74] sm:$0x1] }
  0x49   : > { %3451 = vst [vmem:[#allocation22_spill] sm:$0xff] %v2728_v20  ;;  %2027 = vmatpush3.bf16.xpose.msra.mxu0 %v2728_v20  ;;  %v323_v50 = vor.u32 %v322_v49, %v319_v42  ;;  %v332_v10 = vrot.slane %v330_v58, 4  ;;  %v338_v26 = vrot.slane %v336_v25, 5  ;;  %3453 = vst [vmem:[#allocation24_spill] sm:$0xff] %v2739_v48  ;;  %v531_v53 = vsel %vm2447_vm3, %v526_v54, %v530_v45  ;;  %v2753_v49 = vld [vmem:[%s2405_s23 + $0xc] sm:$0xf] }
  0x4a   : > { %v2744_v63 = vsel %vm708_vm2, %v1932_v36, 0  ;;  %v485_v31 = vshrl.u32 %v2725_v29, 16  ;;  %v488_v32 = vshll.u32 %v2725_v29, 16  ;;  %v2748_v20 = vcombine.low %v521_v5, %v531_v53  ;;  %3456 = vst [vmem:[#allocation27_spill] sm:$0xff] %v2753_v49  ;;  %v2758_v54 = vld [vmem:[%s2405_s23 + $0x10] sm:$0xf] }
  0x4b   : > { %3454 = vst [vmem:[#allocation25_spill] sm:$0xff] %v2744_v63  ;;  %v324_v22 = vrot.slane %v323_v50, 4  ;;  %v333_v7 = vor.u32 %v332_v10, %v328_v6  ;;  %2047 = vmatpush3.bf16.xpose.msra.mxu1 %v2744_v63  ;;  %v494_v58 = vshll.u32 %v2733_v17, 16  ;;  %v498_v42 = vshrl.u32 %v2733_v17, 16  ;;  %3457 = vst [vmem:[#allocation28_spill] sm:$0xff] %v2758_v54 }
  0x4c   : > { %3455 = vst [vmem:[#allocation26_spill] sm:$0xff] %v2748_v20  ;;  %v487_v30 = vrot.slane %v485_v31, 4  ;;  %v490_v45 = vrot.slane %v488_v32, 5  ;;  %v504_v25 = vshll.u32 %v2739_v48, 16  ;;  %2185 = vmatprep.subr.msk.bf16.mxu0 %vm708_vm2, %v2748_v20  ;;  %v2766_v10 = vcombine.low %v2725_v29, %v2733_v17  ;;  %v2769_v63 = vld [vmem:[%s2405_s23 + $0x14] sm:$0x1] }
  0x4d   : > { %v329_v36 = vsel %vm2447_vm3, %v324_v22, %v328_v6  ;;  %v334_v5 = vrot.slane %v333_v7, 4  ;;  %v496_v50 = vrot.slane %v494_v58, 5  ;;  %v500_v53 = vrot.slane %v498_v42, 4  ;;  %3459 = vst [vmem:[#allocation30_spill] sm:$0xff] %v2769_v63 }
  0x4e   : > { %3458 = vst [vmem:[#allocation29_spill] sm:$0xff] %v2766_v10  ;;  %v491_v32 = vor.u32 %v490_v45, %v487_v30  ;;  %v506_v31 = vrot.slane %v504_v25, 5  ;;  %v293_v48 = vshrl.u32 %v2753_v49, 16  ;;  %2194 = vmatprep.subr.msk.bf16.mxu1 %vm708_vm2, %v2766_v10  ;;  %v296_v22 = vshll.u32 %v2753_v49, 16  ;;  %v2780_v25 = vld [vmem:[%s2405_s23 + $0x60] sm:$0xf] }
  0x4f   : > { %v339_v20 = vsel %vm2447_vm3, %v334_v5, %v338_v26  ;;  %v302_v6 = vshll.u32 %v2758_v54, 16  ;;  %v306_v7 = vshrl.u32 %v2758_v54, 16  ;;  %v501_v45 = vor.u32 %v500_v53, %v496_v50  ;;  %v2784_v5 = vld [vmem:[%s2405_s23 + $0x64] sm:$0xf] }
  0x50   : > { %v1914_v58 = vcombine.low %v329_v36, %v339_v20  ;;  %v492_v30 = vrot.slane %v491_v32, 4  ;;  %v295_v42 = vrot.slane %v293_v48, 4  ;;  %v298_v17 = vrot.slane %v296_v22, 5  ;;  %3460 = vst [vmem:[#allocation31_spill] sm:$0xff] %v2784_v5 }
  0x51   : > { %v304_v29 = vrot.slane %v302_v6, 5  ;;  %v308_v57 = vrot.slane %v306_v7, 4  ;;  %v312_v26 = vshll.u32 %v2769_v63, 16  ;;  %v502_v48 = vrot.slane %v501_v45, 4  ;;  %v2795_v6 = vld [vmem:[%s2405_s23 + $0x68] sm:$0x1] }
  0x52   : > { %v2787_v10 = vsel %vm708_vm2, %v1914_v58, 0  ;;  %v497_v20 = vsel %vm2447_vm3, %v492_v30, %v496_v50  ;;  %v1931_v36 = vcombine.low %v2753_v49, %v2758_v54  ;;  %v299_v32 = vor.u32 %v298_v17, %v295_v42  ;;  %3462 = vst [vmem:[#allocation33_spill] sm:$0xff] %v2795_v6  ;;  %v2806_v45 = vld [vmem:[%s2405_s23] sm:$0xf] }
  0x53   : > { %3461 = vst [vmem:[#allocation32_spill] sm:$0xff] %v2787_v10  ;;  %2029 = vmatpush3.bf16.xpose.msra.mxu0 %v2787_v10  ;;  %v309_v53 = vor.u32 %v308_v57, %v304_v29  ;;  %v314_v22 = vrot.slane %v312_v26, 5  ;;  %v461_v7 = vshrl.u32 %v2780_v25, 16  ;;  %v507_v58 = vsel %vm2447_vm3, %v502_v48, %v506_v31  ;;  %3464 = vst [vmem:[#allocation35_spill] sm:$0xff] %v2806_v45 }
  0x54   : > { %v2801_v63 = vsel %vm708_vm2, %v1931_v36, 0  ;;  %v464_v50 = vshll.u32 %v2780_v25, 16  ;;  %v470_v30 = vshll.u32 %v2784_v5, 16  ;;  %v2808_v57 = vcombine.low %v497_v20, %v507_v58  ;;  %v2814_v36 = vld [vmem:[%s2405_s23 + $0x4] sm:$0xf] }
  0x55   : > { %3463 = vst [vmem:[#allocation34_spill] sm:$0xff] %v2801_v63  ;;  %v300_v17 = vrot.slane %v299_v32, 4  ;;  %v310_v42 = vrot.slane %v309_v53, 4  ;;  %2049 = vmatpush3.bf16.xpose.msra.mxu1 %v2801_v63  ;;  %v463_v26 = vrot.slane %v461_v7, 4  ;;  %v474_v31 = vshrl.u32 %v2784_v5, 16  ;;  %3466 = vst [vmem:[#allocation37_spill] sm:$0xff] %v2814_v36 }
  0x56   : > { %3465 = vst [vmem:[#allocation36_spill] sm:$0xff] %v2808_v57  ;;  %v466_v10 = vrot.slane %v464_v50, 5  ;;  %v472_v54 = vrot.slane %v470_v30, 5  ;;  %v480_v48 = vshll.u32 %v2795_v6, 16  ;;  %2186 = vmatprep.subr.msk.bf16.mxu0 %vm708_vm2, %v2808_v57  ;;  %v1938_v53 = vcombine.low %v2780_v25, %v2784_v5  ;;  %v2825_v7 = vld [vmem:[%s2405_s23 + $0x8] sm:$0x1] }
  0x57   : > { %v305_v20 = vsel %vm2447_vm3, %v300_v17, %v304_v29  ;;  %v315_v32 = vsel %vm2447_vm3, %v310_v42, %v314_v22  ;;  %3467 = vst [vmem:[#allocation38_spill] sm:$0xff] %v2825_v7  ;;  %v269_v58 = vshrl.u32 %v2806_v45, 16  ;;  %v476_v63 = vrot.slane %v474_v31, 4 }
  0x58   : > { %v1913_v50 = vcombine.low %v305_v20, %v315_v32  ;;  %v467_v30 = vor.u32 %v466_v10, %v463_v26  ;;  %v482_v6 = vrot.slane %v480_v48, 5  ;;  %2195 = vmatprep.subr.msk.bf16.mxu1 %vm708_vm2, %v1938_v53  ;;  %v272_v49 = vshll.u32 %v2806_v45, 16 }
  0x59   : > { %v271_v57 = vrot.slane %v269_v58, 4  ;;  %v278_v29 = vshll.u32 %v2814_v36, 16  ;;  %v282_v22 = vshrl.u32 %v2814_v36, 16  ;;  %v477_v5 = vor.u32 %v476_v63, %v472_v54  ;;  %v3497_v63 = vld [vmem:[#allocation3_spill] sm:$0xff] }
  0x5a   : > { %v2833_v17 = vsel %vm708_vm2, %v1913_v50, 0  ;;  %v468_v42 = vrot.slane %v467_v30, 4  ;;  %v288_v20 = vshll.u32 %v2825_v7, 16  ;;  %v274_v10 = vrot.slane %v272_v49, 5  ;;  %v2851_v7 = vld [vmem:[%s2405_s23 + $0xc0] sm:$0xf] }
  0x5b   : > { %3468 = vst [vmem:[#allocation39_spill] sm:$0xff] %v2833_v17  ;;  %2031 = vmatpush3.bf16.xpose.msra.mxu0 %v2833_v17  ;;  %v280_v26 = vrot.slane %v278_v29, 5  ;;  %v284_v31 = vrot.slane %v282_v22, 4  ;;  %v1930_v48 = vcombine.low %v2806_v45, %v2814_v36  ;;  %v478_v58 = vrot.slane %v477_v5, 4  ;;  %v2854_v36 = vld [vmem:[%s2405_s23 + $0xc4] sm:$0xf] }
  0x5c   : > { %v473_v32 = vsel %vm2447_vm3, %v468_v42, %v472_v54  ;;  %v290_v50 = vrot.slane %v288_v20, 5  ;;  %v1962_v30 = vrot.slane %v2408_v2, 9  ;;  %v275_v17 = vor.u32 %v274_v10, %v271_v57 }
  0x5d   : > { %v285_v49 = vor.u32 %v284_v31, %v280_v26  ;;  %v892_v29 = vsel %vm708_vm2, %v1930_v48, 0  ;;  %v1108_v22 = vrot.slane %v2411_v3, 5  ;;  %v483_v54 = vsel %vm2447_vm3, %v478_v58, %v482_v6 }
  0x5e   : > { %2051 = vmatpush3.bf16.xpose.msra.mxu1 %v892_v29  ;;  %v1954_v5 = vrot.slane %v2421_v9, 9  ;;  %v1052_v42 = vrot.slane %v2430_v13, 5  ;;  %v1055_v2 = vrot.slane %v2433_v14, 5  ;;  %v2861_v57 = vcombine.low %v473_v32, %v483_v54 }
  0x5f   : > { %v276_v20 = vrot.slane %v275_v17, 4  ;;  %v286_v10 = vrot.slane %v285_v49, 4  ;;  %v1109_v3 = vsel %vm2843_vm6, %v1962_v30, %v1108_v22  ;;  %v1110_v31 = vrot.slane %v1108_v22, 4 }
  0x60   : > { %v1053_v48 = vsel %vm2843_vm6, %v1954_v5, %v1052_v42  ;;  %v1054_v45 = vrot.slane %v1052_v42, 4  ;;  %v2869_v6 = vcombine.low %v2851_v7, %v2854_v36  ;;  %2187 = vmatprep.subr.msk.bf16.mxu0 %vm708_vm2, %v2861_v57  ;;  %v3471_v17 = vrot.slane %v2414_v4, 5  ;;  %v2894_v4 = vld [vmem:[%s3365_s1 + $0x18] sm:$0xff]  }
  0x61   : > { %v281_v9 = vsel %vm2447_vm3, %v276_v20, %v280_v26  ;;  %v291_v13 = vsel %vm2447_vm3, %v286_v10, %v290_v50  ;;  %v2888_v26 = vsel %vm708_vm2, %v1938_v53, 0  ;;  %v1961_v50 = vrot.slane %v2443_v27, 9 }
  0x62   : > { %v1912_v14 = vcombine.low %v281_v9, %v291_v13  ;;  %v1112_v32 = vsel %vm2843_vm6, %v1110_v31, %v3471_v17  ;;  %v1056_v58 = vsel %vm2843_vm6, %v1054_v45, %v1055_v2  ;;  %2204 = vmatprep.subr.msk.bf16.mxu1 %vm708_vm2, %v2869_v6  ;;  %v1101_v45 = vrot.slane %v2454_v33, 5 }
  0x63   : > { %v2885_v30 = vcombine.low %v1109_v3, %v1112_v32  ;;  %v1973_v49 = vcombine.low %v1053_v48, %v1056_v58  ;;  %v1104_v22 = vrot.slane %v2460_v40, 5  ;;  %v1953_v54 = vrot.slane %v2471_v47, 9  ;;  %v2939_v48 = vld [vmem:[%s3365_s1 + $0x10] sm:$0xff]  }
  0x64   : > { %v713_v29 = vsel %vm708_vm2, %v1912_v14, 0  ;;  %v1045_v27 = vrot.slane %v2478_v56, 5  ;;  %v1048_v5 = vrot.slane %v2489_v60, 5  ;;  %v1960_v42 = vrot.slane %v2499_v16, 9 }
  0x65   : > { %2033 = vmatpush3.bf16.xpose.msra.mxu0 %v713_v29  ;;  %2053 = vmatmul.mubr.msk.bf16.vlgmr.msra.gmra.mxu1 %vm708_vm2, %v2395_v1  ;;  %v2903_v53 = vsel %vm708_vm2, %v1973_v49, 0  ;;  %v1102_v33 = vsel %vm2843_vm6, %v1961_v50, %v1101_v45  ;;  %v1103_v40 = vrot.slane %v1101_v45, 4  ;;  %v1094_v1 = vrot.slane %v2504_v21, 5 }
  0x66   : > { %2196 = vmatprep.subr.msk.bf16.mxu0 %vm708_vm2, %v2885_v30  ;;  %2073 = vmatpush3.bf16.xpose.msra.mxu1 %v2888_v26  ;;  %v1097_v47 = vrot.slane %v2518_v34, 5  ;;  %v1046_v56 = vsel %vm2843_vm6, %v1953_v54, %v1045_v27  ;;  %v1047_v2 = vrot.slane %v1045_v27, 4  ;;  %v1952_v60 = vrot.slane %v2528_v44, 9 }
  0x67   : > { %2205 = vmatprep.subr.msk.bf16.mxu1 %vm708_vm2, %v2427_v12  ;;  %v1038_v16 = vrot.slane %v2533_v51, 5  ;;  %2088 = vmatprep.mubr.msk.bf16.mxu1 %vm708_vm2, %v2894_v4  ;;  %v1105_v20 = vsel %vm2843_vm6, %v1103_v40, %v1104_v22  ;;  %v1095_v21 = vsel %vm2843_vm6, %v1960_v42, %v1094_v1  ;;  %v1096_v34 = vrot.slane %v1094_v1, 4 }
  0x68   : > { %v1041_v10 = vrot.slane %v2545_v61, 5  ;;  %v2928_v3 = vcombine.low %v1102_v33, %v1105_v20  ;;  %v1049_v31 = vsel %vm2843_vm6, %v1047_v2, %v1048_v5  ;;  %v1959_v61 = vrot.slane %v2555_v19, 9 }
  0x69   : > { %v2934_v44 = vsel %vm2843_vm6, %v1952_v60, %v1038_v16  ;;  %v1040_v51 = vrot.slane %v1038_v16, 4  ;;  %v1972_v9 = vcombine.low %v1046_v56, %v1049_v31  ;;  %v1098_v13 = vsel %vm2843_vm6, %v1096_v34, %v1097_v47  ;;  %v3474_v34 = vld [vmem:[#allocation21_spill] sm:$0xff] }
  0x6a   : > { %v1087_v14 = vrot.slane %v2567_v35, 5  ;;  %v1090_v32 = vrot.slane %v2573_v41, 5  ;;  %v1951_v58 = vrot.slane %v2583_v52, 9  ;;  %v2953_v49 = vcombine.low %v1095_v21, %v1098_v13  ;;  %v3475_v13 = vld [vmem:[#allocation4_spill] sm:$0xff] }
  0x6b   : > { %v2947_v17 = vsel %vm2843_vm6, %v1040_v51, %v1041_v10  ;;  %v1031_v29 = vrot.slane %v2589_v62, 5  ;;  %v1034_v41 = vrot.slane %v2604_v24, 5  ;;  %v1958_v52 = vrot.slane %v2612_v37, 9 }
  0x6c   : > { %2035 = vmatmul.mubr.msk.bf16.vlgmr.msra.gmra.mxu0 %vm708_vm2, %v2390_v0  ;;  %v1971_v50 = vcombine.low %v2934_v44, %v2947_v17  ;;  %v1088_v19 = vsel %vm2843_vm6, %v1959_v61, %v1087_v14  ;;  %v1089_v35 = vrot.slane %v1087_v14, 4  ;;  %v1080_v45 = vrot.slane %v2618_v38, 5  ;;  %v3476_v14 = vld [vmem:[#allocation23_spill] sm:$0xff] }
  0x6d   : > { %2055 = vmatpush3.bf16.xpose.msra.mxu0 %v2903_v53  ;;  %2070 = vmatprep.mubr.msk.bf16.mxu0 %vm708_vm2, %v2939_v48  ;;  %v2969_v0 = vsel %vm708_vm2, %v1972_v9, 0  ;;  %v1083_v24 = vrot.slane %v2626_v15, 5  ;;  %v1950_v37 = vrot.slane %v2630_v18, 9  ;;  %v2982_v22 = vsel %vm2843_vm6, %v1951_v58, %v1031_v29 }
  0x6e   : > { %2197 = vmatprep.subr.msk.bf16.mxu0 %vm708_vm2, %v2928_v3  ;;  %2075 = vmatpush3.bf16.xpose.msra.mxu1 %v2457_v39  ;;  %v1091_v62 = vsel %vm2843_vm6, %v1089_v35, %v1090_v32  ;;  %v1033_v54 = vrot.slane %v1031_v29, 4  ;;  %v1081_v27 = vsel %vm2843_vm6, %v1958_v52, %v1080_v45  ;;  %v1082_v5 = vrot.slane %v1080_v45, 4  ;;  %v3477_v32 = vld [vmem:[#allocation24_spill] sm:$0xff]  ;;  %v3479_v29 = vld [vmem:[#allocation6_spill] sm:$0xff] }
  0x6f   : > { %2206 = vmatprep.subr.msk.bf16.mxu1 %vm708_vm2, %v2486_v59  ;;  %v2978_v38 = vcombine.low %v1088_v19, %v1091_v62  ;;  %v1024_v42 = vrot.slane %v2643_v46, 5  ;;  %v1027_v15 = vrot.slane %v2657_v8, 5  ;;  %v1957_v18 = vrot.slane %v2669_v11, 9  ;;  %v3478_v19 = vld [vmem:[#allocation27_spill] sm:$0xff]  ;;  %v3480_v52 = vld [vmem:[#allocation28_spill] sm:$0xff]  ;;  %v3481_v62 = vld [vmem:[#allocation30_spill] sm:$0xff] }
  0x70   : > { %v1035_v33 = vsel %vm2843_vm6, %v1033_v54, %v1034_v41  ;;  %v1073_v40 = vrot.slane %v2677_v55, 5  ;;  %v1076_v1 = vrot.slane %v2686_v43, 5  ;;  %v1949_v47 = vrot.slane %v2695_v23, 9  ;;  %v3472_v55 = vld [vmem:[#allocation18_spill] sm:$0xff]  ;;  %v3473_v23 = vld [vmem:[#allocation20_spill] sm:$0xff] }
  0x71   : > { %v1970_v56 = vcombine.low %v2982_v22, %v1035_v33  ;;  %v1084_v2 = vsel %vm2843_vm6, %v1082_v5, %v1083_v24  ;;  %v1025_v46 = vsel %vm2843_vm6, %v1950_v37, %v1024_v42  ;;  %v1026_v8 = vrot.slane %v1024_v42, 4  ;;  %v3483_v33 = vld [vmem:[#allocation33_spill] sm:$0xff] }
  0x72   : > { %v2999_v60 = vcombine.low %v1081_v27, %v1084_v2  ;;  %v1074_v11 = vsel %vm2843_vm6, %v1957_v18, %v1073_v40  ;;  %v1075_v16 = vrot.slane %v1073_v40, 4  ;;  %v1017_v20 = vrot.slane %v3472_v55, 5  ;;  %v3484_v2 = vld [vmem:[#allocation35_spill] sm:$0xff] }
  0x73   : > { %v1028_v43 = vsel %vm2843_vm6, %v1026_v8, %v1027_v15  ;;  %v1020_v21 = vrot.slane %v3473_v23, 5  ;;  %v1956_v10 = vrot.slane %v3474_v34, 9  ;;  %v1066_v17 = vrot.slane %v3476_v14, 5  ;;  %v3482_v15 = vld [vmem:[#allocation31_spill] sm:$0xff]  ;;  %v3485_v8 = vld [vmem:[#allocation37_spill] sm:$0xff]  ;;  %v3488_v14 = vld [vmem:[#allocation10_spill] sm:$0xff] }
  0x74   : > { %v1969_v31 = vcombine.low %v1025_v46, %v1028_v43  ;;  %v1077_v44 = vsel %vm2843_vm6, %v1075_v16, %v1076_v1  ;;  %v1018_v51 = vsel %vm2843_vm6, %v1949_v47, %v1017_v20  ;;  %v1019_v9 = vrot.slane %v1017_v20, 4 }
  0x75   : > { %2057 = vmatpush3.bf16.xpose.msra.mxu0 %v2969_v0  ;;  %v3016_v61 = vcombine.low %v1074_v11, %v1077_v44  ;;  %v1069_v58 = vrot.slane %v3477_v32, 5  ;;  %v1948_v35 = vrot.slane %v3478_v19, 9  ;;  %v1010_v45 = vrot.slane %v3480_v52, 5  ;;  %v3487_v44 = vld [vmem:[#allocation9_spill] sm:$0xff]  ;;  %v3490_v19 = vld [vmem:[#allocation14_spill] sm:$0xff] }
  0x76   : > { %2198 = vmatprep.subr.msk.bf16.mxu0 %vm708_vm2, %v2953_v49  ;;  %2077 = vmatpush3.bf16.xpose.msra.mxu1 %v3475_v13  ;;  %v1021_v41 = vsel %vm2843_vm6, %v1019_v9, %v1020_v21  ;;  %v1013_v24 = vrot.slane %v3481_v62, 5  ;;  %v1067_v22 = vsel %vm2843_vm6, %v1956_v10, %v1066_v17  ;;  %v1068_v54 = vrot.slane %v1066_v17, 4  ;;  %v3486_v21 = vld [vmem:[#allocation38_spill] sm:$0xff]  ;;  %v3492_v62 = vld [vmem:[#allocation19_spill] sm:$0xff] }
  0x77   : > { %2207 = vmatprep.subr.msk.bf16.mxu1 %vm708_vm2, %v3479_v29  ;;  %v1968_v37 = vcombine.low %v1018_v51, %v1021_v41  ;;  %v1955_v27 = vrot.slane %v2780_v25, 9  ;;  %v1011_v5 = vsel %vm2843_vm6, %v1948_v35, %v1010_v45  ;;  %v1012_v42 = vrot.slane %v1010_v45, 4 }
  0x78   : > { %v1059_v18 = vrot.slane %v3482_v15, 5  ;;  %v1062_v40 = vrot.slane %v3483_v33, 5  ;;  %v3035_v1 = vsel %vm708_vm2, %v1971_v50, 0  ;;  %v1070_v47 = vsel %vm2843_vm6, %v1068_v54, %v1069_v58  ;;  %v3489_v58 = vld [vmem:[#allocation12_spill] sm:$0xff]  ;;  %v259_v54 = vld [vmem:[%s2405_s23 + $0xc8] sm:$0x1] }
  0x79   : > { %v1947_v46 = vrot.slane %v3484_v2, 9  ;;  %v1003_v11 = vrot.slane %v3485_v8, 5  ;;  %v3041_v16 = vcombine.low %v1067_v22, %v1070_v47  ;;  %v1014_v25 = vsel %vm2843_vm6, %v1012_v42, %v1013_v24  ;;  %v3493_v47 = vld [vmem:[#allocation25_spill] sm:$0xff] }
  0x7a   : > { %v1060_v55 = vsel %vm2843_vm6, %v1955_v27, %v1059_v18  ;;  %v1061_v20 = vrot.slane %v1059_v18, 4  ;;  %v1967_v43 = vcombine.low %v1011_v5, %v1014_v25  ;;  %v1006_v34 = vrot.slane %v3486_v21, 5 }
  0x7b   : > { %v1004_v50 = vsel %vm2843_vm6, %v1947_v46, %v1003_v11  ;;  %v1005_v23 = vrot.slane %v1003_v11, 4  ;;  %v3061_v32 = vsel %vm708_vm2, %v1970_v56, 0  ;;  %v3070_v35 = vsel %vm708_vm2, %v1969_v31, 0  ;;  %v3491_v56 = vld [vmem:[#allocation16_spill] sm:$0xff] }
  0x7c   : > { %v1063_v10 = vsel %vm2843_vm6, %v1061_v20, %v1062_v40  ;;  %v1334_v41 = vshrl.u32 %v2851_v7, 16  ;;  %v1337_v52 = vshll.u32 %v2851_v7, 16  ;;  %v1347_v45 = vshrl.u32 %v2854_v36, 16 }
  0x7d   : > { %2059 = vmatpush3.bf16.xpose.msra.mxu0 %v3035_v1  ;;  %v1974_v51 = vcombine.low %v1060_v55, %v1063_v10  ;;  %v1007_v9 = vsel %vm2843_vm6, %v1005_v23, %v1006_v34  ;;  %v1343_v24 = vshll.u32 %v2854_v36, 16  ;;  %v1424_v31 = vrot.slane %v2854_v36, 5  ;;  %v3494_v36 = vld [vmem:[#allocation29_spill] sm:$0xff]  ;;  %v3495_v23 = vld [vmem:[#allocation34_spill] sm:$0xff] }
  0x7e   : > { %2199 = vmatprep.subr.msk.bf16.mxu0 %vm708_vm2, %v2978_v38  ;;  %2079 = vmatpush3.bf16.xpose.msra.mxu1 %v3487_v44  ;;  %v1966_v17 = vcombine.low %v1004_v50, %v1007_v9  ;;  %v3084_v22 = vsel %vm708_vm2, %v1968_v37, 0  ;;  %v1336_v27 = vrot.slane %v1334_v41, 4  ;;  %v1339_v5 = vrot.slane %v1337_v52, 5  ;;  %v3121_v41 = vld [vmem:[%s3365_s1 + $0x28] sm:$0xff]   ;;  %v3124_v52 = vld [vmem:[%s2405_s23 + $0xd0] sm:$0xf] }
  0x7f   : > { %2208 = vmatprep.subr.msk.bf16.mxu1 %vm708_vm2, %v3488_v14  ;;  %v1345_v42 = vrot.slane %v1343_v24, 5  ;;  %v1349_v15 = vrot.slane %v1347_v45, 4  ;;  %v1993_v18 = vrot.slane %v2851_v7, 9  ;;  %v1426_v33 = vrot.slane %v1424_v31, 4 }
  0x80   : > { %v1427_v40 = vrot.slane %v259_v54, 5  ;;  %v1340_v37 = vor.u32 %v1339_v5, %v1336_v27  ;;  %v1353_v46 = vshll.u32 %v259_v54, 16  ;;  %v3099_v11 = vsel %vm708_vm2, %v1967_v43, 0  ;;  %v3144_v54 = vld [vmem:[%s3365_s1 + $0x20] sm:$0xff]  }
  0x81   : > { %v1350_v2 = vor.u32 %v1349_v15, %v1345_v42  ;;  %v1425_v8 = vsel %vm2843_vm6, %v1993_v18, %v1424_v31  ;;  %v1173_v34 = vsel %vm708_vm2, %v1966_v17, 0  ;;  %v3116_v9 = vsel %vm708_vm2, %v1974_v51, 0  ;;  %v262_v17 = vld [vmem:[%s2405_s23 + $0xd4] sm:$0x1]  ;;  %v3496_v18 = vld [vmem:[#allocation2_spill] sm:$0xff] }
  0x82   : > { %v1428_v7 = vsel %vm2843_vm6, %v1426_v33, %v1427_v40  ;;  %v1341_v25 = vrot.slane %v1340_v37, 4  ;;  %v1355_v20 = vrot.slane %v1353_v46, 5  ;;  %v1650_v45 = vrot.slane %v3124_v52, 5  ;;  %v3500_v33 = vld [vmem:[#allocation8_spill] sm:$0xff]  ;;  %v3501_v40 = vld [vmem:[#allocation11_spill] sm:$0xff]  ;;  %v3502_v37 = vld [vmem:[#allocation13_spill] sm:$0xff] }
  0x83   : > { %v1351_v55 = vrot.slane %v1350_v2, 4  ;;  %v3101_v50 = vcombine.low %v1425_v8, %v1428_v7  ;;  %v1573_v8 = vshrl.u32 %v3124_v52, 16  ;;  %v1569_v7 = vshll.u32 %v3124_v52, 16 }
  0x84   : > { %v1346_v21 = vsel %vm2447_vm3, %v1341_v25, %v1345_v42  ;;  %v1652_v31 = vrot.slane %v1650_v45, 4  ;;  %v3156_v42 = vsel %vm708_vm2, %v2861_v57, 0  ;;  %v3498_v57 = vld [vmem:[#allocation5_spill] sm:$0xff] }
  0x85   : > { %2061 = vmatpush3.bf16.xpose.msra.mxu0 %v3061_v32  ;;  %v1356_v43 = vsel %vm2447_vm3, %v1351_v55, %v1355_v20  ;;  %v1571_v20 = vrot.slane %v1569_v7, 5 }
  0x86   : > { %2200 = vmatprep.subr.msk.bf16.mxu0 %vm708_vm2, %v2999_v60  ;;  %2081 = vmatpush3.bf16.xpose.msra.mxu1 %v3489_v58  ;;  %v3113_v10 = vcombine.low %v1346_v21, %v1356_v43  ;;  %v3503_v21 = vld [vmem:[#allocation15_spill] sm:$0xff]  ;;  %v3504_v43 = vld [vmem:[#allocation17_spill] sm:$0xff] }
  0x87   : > { %2209 = vmatprep.subr.msk.bf16.mxu1 %vm708_vm2, %v3490_v19 }
  0x8d   : > { %2063 = vmatpush3.bf16.xpose.msra.mxu0 %v3070_v35 }
  0x8e   : > { %2201 = vmatprep.subr.msk.bf16.mxu0 %vm708_vm2, %v3016_v61  ;;  %2083 = vmatpush3.bf16.xpose.msra.mxu1 %v3491_v56 }
  0x8f   : > { %2210 = vmatprep.subr.msk.bf16.mxu1 %vm708_vm2, %v3492_v62 }
  0x95   : > { %2065 = vmatpush3.bf16.xpose.msra.mxu0 %v3084_v22 }
  0x96   : > { %2202 = vmatprep.subr.msk.bf16.mxu0 %vm708_vm2, %v3041_v16  ;;  %2085 = vmatpush3.bf16.xpose.msra.mxu1 %v3493_v47 }
  0x97   : > { %2211 = vmatprep.subr.msk.bf16.mxu1 %vm708_vm2, %v3494_v36 }
  0x9d   : > { %2067 = vmatpush3.bf16.xpose.msra.mxu0 %v3099_v11 }
  0x9e   : > { %2203 = vmatprep.subr.msk.bf16.mxu0 %vm708_vm2, %v1974_v51  ;;  %2087 = vmatpush3.bf16.xpose.msra.mxu1 %v3495_v23  ;;  %v3133_v51 = vld [vmem:[%s2405_s23 + $0xcc] sm:$0xf]  ;;  %v1575_v23 = vrot.slane %v1573_v8, 4 }
  0x9f   : > { %2220 = vmatprep.subr.msk.bf16.mxu1 %vm708_vm2, %v3101_v50  ;;  %v2009_v24 = vrot.slane %v3133_v51, 9  ;;  %v1560_v2 = vshrl.u32 %v3133_v51, 16  ;;  %v1563_v46 = vshll.u32 %v3133_v51, 16 }
  0xa1   : > { %v3148_v27 = vsel %vm2843_vm6, %v2009_v24, %v1650_v45  ;;  %v1562_v25 = vrot.slane %v1560_v2, 4  ;;  %v1565_v55 = vrot.slane %v1563_v46, 5  ;;  %v1576_v45 = vor.u32 %v1575_v23, %v1571_v20  ;;  %v3505_v2 = vld [vmem:[#allocation22_spill] sm:$0xff] }
  0xa2   : > { %v1579_v24 = vshll.u32 %v262_v17, 16  ;;  %v3506_v46 = vld [vmem:[#allocation26_spill] sm:$0xff]  ;;  %v2002_v23 = vcombine.low %v3133_v51, %v3124_v52  ;;  %v919_v52 = vsel %vm708_vm2, %v3494_v36, 0 }
  0xa4   : > { %v1581_v15 = vrot.slane %v1579_v24, 5 }
  0xa5   : > { %2069 = vmatpush3.bf16.xpose.msra.mxu0 %v1173_v34  ;;  %2089 = vmatmul.mubr.msk.bf16.vlgmr.msra.gmra.mxu1 %vm708_vm2, %v2894_v4  ;;  %v1653_v4 = vrot.slane %v262_v17, 5  ;;  %v1566_v34 = vor.u32 %v1565_v55, %v1562_v25  ;;  %v3507_v25 = vld [vmem:[#allocation32_spill] sm:$0xff] }
  0xa6   : > { %2212 = vmatprep.subr.msk.bf16.mxu0 %vm708_vm2, %v3113_v10  ;;  %2109 = vmatpush3.bf16.xpose.msra.mxu1 %v3116_v9  ;;  %v3508_v55 = vld [vmem:[#allocation36_spill] sm:$0xff] }
  0xa7   : > { %2221 = vmatprep.subr.msk.bf16.mxu1 %vm708_vm2, %v2885_v30  ;;  %2124 = vmatprep.mubr.msk.bf16.mxu1 %vm708_vm2, %v3121_v41  ;;  %v3152_v5 = vsel %vm2843_vm6, %v1652_v31, %v1653_v4  ;;  %v1567_v31 = vrot.slane %v1566_v34, 4  ;;  %v1577_v4 = vrot.slane %v1576_v45, 4  ;;  %v740_v34 = vsel %vm708_vm2, %v3508_v55, 0 }
  0xa9   : > { %v1572_v8 = vsel %vm2447_vm3, %v1567_v31, %v1571_v20  ;;  %v1582_v7 = vsel %vm2447_vm3, %v1577_v4, %v1581_v15  ;;  %v3509_v15 = vld [vmem:[#allocation39_spill] sm:$0xff] }
  0xaa   : > { %v2007_v17 = vcombine.low %v1572_v8, %v1582_v7 }
  0xac   : > { %2071 = vmatmul.mubr.msk.bf16.vlgmr.msra.gmra.mxu0 %vm708_vm2, %v2939_v48  ;;  %v3499_v48 = vld [vmem:[#allocation7_spill] sm:$0xff] }
  0xad   : > { %2091 = vmatpush3.bf16.xpose.msra.mxu0 %v3156_v42  ;;  %2106 = vmatprep.mubr.msk.bf16.mxu0 %vm708_vm2, %v3144_v54 }
  0xae   : > { %2213 = vmatprep.subr.msk.bf16.mxu0 %vm708_vm2, %v3496_v18  ;;  %2111 = vmatpush3.bf16.xpose.msra.mxu1 %v2903_v53 }
  0xaf   : > { %2222 = vmatprep.subr.msk.bf16.mxu1 %vm708_vm2, %v2928_v3 }
  0xb5   : > { %2093 = vmatpush3.bf16.xpose.msra.mxu0 %v3497_v63 }
  0xb6   : > { %2214 = vmatprep.subr.msk.bf16.mxu0 %vm708_vm2, %v3498_v57  ;;  %2113 = vmatpush3.bf16.xpose.msra.mxu1 %v2969_v0 }
  0xb7   : > { %2223 = vmatprep.subr.msk.bf16.mxu1 %vm708_vm2, %v2953_v49 }
  0xbd   : > { %2095 = vmatpush3.bf16.xpose.msra.mxu0 %v3499_v48 }
  0xbe   : > { %2215 = vmatprep.subr.msk.bf16.mxu0 %vm708_vm2, %v3500_v33  ;;  %2115 = vmatpush3.bf16.xpose.msra.mxu1 %v3035_v1 }
  0xbf   : > { %2224 = vmatprep.subr.msk.bf16.mxu1 %vm708_vm2, %v2978_v38 }
  0xc5   : > { %2097 = vmatpush3.bf16.xpose.msra.mxu0 %v3501_v40 }
  0xc6   : > { %2216 = vmatprep.subr.msk.bf16.mxu0 %vm708_vm2, %v3502_v37  ;;  %2117 = vmatpush3.bf16.xpose.msra.mxu1 %v3061_v32 }
  0xc7   : > { %2225 = vmatprep.subr.msk.bf16.mxu1 %vm708_vm2, %v2999_v60 }
  0xcd   : > { %2099 = vmatpush3.bf16.xpose.msra.mxu0 %v3503_v21 }
  0xce   : > { %2217 = vmatprep.subr.msk.bf16.mxu0 %vm708_vm2, %v3504_v43  ;;  %2119 = vmatpush3.bf16.xpose.msra.mxu1 %v3070_v35 }
  0xcf   : > { %2226 = vmatprep.subr.msk.bf16.mxu1 %vm708_vm2, %v3016_v61 }
  0xd5   : > { %2101 = vmatpush3.bf16.xpose.msra.mxu0 %v3505_v2 }
  0xd6   : > { %2218 = vmatprep.subr.msk.bf16.mxu0 %vm708_vm2, %v3506_v46  ;;  %2121 = vmatpush3.bf16.xpose.msra.mxu1 %v3084_v22 }
  0xd7   : > { %2227 = vmatprep.subr.msk.bf16.mxu1 %vm708_vm2, %v3041_v16 }
  0xdd   : > { %2103 = vmatpush3.bf16.xpose.msra.mxu0 %v3507_v25 }
  0xde   : > { %2219 = vmatprep.subr.msk.bf16.mxu0 %vm708_vm2, %v3508_v55  ;;  %2123 = vmatpush3.bf16.xpose.msra.mxu1 %v3099_v11  ;;  %v2303_v11 = vld [vmem:[%s3365_s1 + $0x30] sm:$0xff]  }
  0xdf   : > { %2236 = vmatprep.subr.msk.bf16.mxu1 %vm708_vm2, %v2007_v17 }
  0xe5   : > { %2105 = vmatpush3.bf16.xpose.msra.mxu0 %v3509_v15  ;;  %2125 = vmatmul.mubr.msk.bf16.vlgmr.msra.gmra.mxu1 %vm708_vm2, %v3121_v41 }
  0xe6   : > { %2228 = vmatprep.subr.msk.bf16.mxu0 %vm708_vm2, %v2002_v23  ;;  %2145 = vmatpush3.bf16.xpose.msra.mxu1 %v740_v34 }
  0xe7   : > { %2237 = vmatprep.subr.msk.bf16.mxu1 %vm708_vm2, %v3113_v10  ;;  %2160 = vmatprep.mubr.msk.bf16.mxu1 %vm708_vm2, %v2304_v28 }
  0xec   : > { %2107 = vmatmul.mubr.msk.bf16.vlgmr.msra.gmra.mxu0 %vm708_vm2, %v3144_v54 }
  0xed   : > { %2127 = vmatpush3.bf16.xpose.msra.mxu0 %v919_v52  ;;  %2142 = vmatprep.mubr.msk.bf16.mxu0 %vm708_vm2, %v2303_v11 }
  0xee   : > { %2229 = vmatprep.subr.msk.bf16.mxu0 %vm708_vm2, %v2869_v6  ;;  %2147 = vmatpush3.bf16.xpose.msra.mxu1 %v3156_v42  ;;  %v2346_v6 = vmov 0  }
  0xef   : > { %2238 = vmatprep.subr.msk.bf16.mxu1 %vm708_vm2, %v3496_v18  ;;  %2278 = vset.pattern.permute.xlu0 %v2346_v6 }
  0xf5   : > { %2129 = vmatpush3.bf16.xpose.msra.mxu0 %v2888_v26  ;;  %v1719_v26 = vld [vmem:[%s3366_s2] sm:$0xff] }
  0xf6   : > { %2230 = vmatprep.subr.msk.bf16.mxu0 %vm708_vm2, %v2427_v12  ;;  %2149 = vmatpush3.bf16.xpose.msra.mxu1 %v3497_v63  ;;  %v3510_v12 = vcombine.low %v3148_v27, %v3152_v5 }
  0xf7   : > { %2239 = vmatprep.subr.msk.bf16.mxu1 %vm708_vm2, %v3498_v57  ;;  %1723 = vperm.xlu0 %2278, %v1719_v26  }
  0xfd   : > { %2131 = vmatpush3.bf16.xpose.msra.mxu0 %v2457_v39  ;;  %v2305_v39 = vld [vmem:[%s3365_s1 + $0x40] sm:$0xff]  }
  0xfe   : > { %2231 = vmatprep.subr.msk.bf16.mxu0 %vm708_vm2, %v2486_v59  ;;  %2151 = vmatpush3.bf16.xpose.msra.mxu1 %v3499_v48  ;;  %v1200_v59 = vsel %vm708_vm2, %v3041_v16, 0 }
  0xff   : > { %2240 = vmatprep.subr.msk.bf16.mxu1 %vm708_vm2, %v3500_v33 }
 0x105   : > { %2133 = vmatpush3.bf16.xpose.msra.mxu0 %v3475_v13  ;;  %v1720_v13 = vld [vmem:[%s3366_s2 + $0x8] sm:$0xff] }
 0x106   : > { %2232 = vmatprep.subr.msk.bf16.mxu0 %vm708_vm2, %v3479_v29  ;;  %2153 = vmatpush3.bf16.xpose.msra.mxu1 %v3501_v40 }
 0x107   : > { %2241 = vmatprep.subr.msk.bf16.mxu1 %vm708_vm2, %v3502_v37  ;;  %1728 = vperm.xlu0 %2278, %v1720_v13  }
 0x10d   : > { %2135 = vmatpush3.bf16.xpose.msra.mxu0 %v3487_v44 }
 0x10e   : > { %2233 = vmatprep.subr.msk.bf16.mxu0 %vm708_vm2, %v3488_v14  ;;  %2155 = vmatpush3.bf16.xpose.msra.mxu1 %v3503_v21 }
 0x10f   : > { %2242 = vmatprep.subr.msk.bf16.mxu1 %vm708_vm2, %v3504_v43 }
 0x115   : > { %2137 = vmatpush3.bf16.xpose.msra.mxu0 %v3489_v58 }
 0x116   : > { %2234 = vmatprep.subr.msk.bf16.mxu0 %vm708_vm2, %v3490_v19  ;;  %2157 = vmatpush3.bf16.xpose.msra.mxu1 %v3505_v2 }
 0x117   : > { %2243 = vmatprep.subr.msk.bf16.mxu1 %vm708_vm2, %v3506_v46 }
 0x11d   : > { %2139 = vmatpush3.bf16.xpose.msra.mxu0 %v3491_v56 }
 0x11e   : > { %2235 = vmatprep.subr.msk.bf16.mxu0 %vm708_vm2, %v3492_v62  ;;  %2159 = vmatpush3.bf16.xpose.msra.mxu1 %v3507_v25 }
 0x125   : > { %2141 = vmatpush3.bf16.xpose.msra.mxu0 %v3493_v47  ;;  %2161 = vmatmul.mubr.msk.bf16.vlgmr.msra.gmra.mxu1 %vm708_vm2, %v2304_v28 }
 0x126   : > { %2244 = vmatprep.subr.msk.bf16.mxu0 %vm708_vm2, %v3510_v12 }
 0x12c   : > { %2143 = vmatmul.mubr.msk.bf16.vlgmr.msra.gmra.mxu0 %vm708_vm2, %v2303_v11 }
 0x12d   : > { %2163 = vmatpush3.bf16.xpose.msra.mxu0 %v1200_v59  ;;  %2178 = vmatprep.mubr.msk.bf16.mxu0 %vm708_vm2, %v2305_v39 }
 0x12e   : > { %2245 = vmatprep.subr.msk.bf16.mxu0 %vm708_vm2, %v3101_v50 }
 0x135   : > { %2165 = vmatpush3.bf16.xpose.msra.mxu0 %v3116_v9 }
 0x136   : > { %2246 = vmatprep.subr.msk.bf16.mxu0 %vm708_vm2, %v2885_v30  ;;  %v794_v30 = vpop.f32.mrf.mxu0 }
 0x13d   : > { %2167 = vmatpush3.bf16.xpose.msra.mxu0 %v2903_v53  ;;  %v796_v53 = vpop.f32.mrf.mxu0 }
 0x13e   : > { %2247 = vmatprep.subr.msk.bf16.mxu0 %vm708_vm2, %v2928_v3  ;;  %v973_v3 = vpop.f32.mrf.mxu1 }
 0x13f   : > { %v974_v47 = vadd.f32 %v973_v3, %v794_v30 }
 0x145   : > { %2169 = vmatpush3.bf16.xpose.msra.mxu0 %v2969_v0  ;;  %v975_v0 = vpop.f32.mrf.mxu1 }
 0x146   : > { %2248 = vmatprep.subr.msk.bf16.mxu0 %vm708_vm2, %v2953_v49  ;;  %v798_v49 = vpop.f32.mrf.mxu0  ;;  %v976_v50 = vadd.f32 %v975_v0, %v796_v53 }
 0x147   : > { %v977_v29 = vpop.f32.mrf.mxu1 }
 0x148   : > { %v978_v41 = vadd.f32 %v977_v29, %v798_v49 }
 0x149   : > { %v979_v16 = vpop.f32.mrf.mxu1 }
 0x14d   : > { %2171 = vmatpush3.bf16.xpose.msra.mxu0 %v3035_v1 }
 0x14e   : > { %2249 = vmatprep.subr.msk.bf16.mxu0 %vm708_vm2, %v2978_v38  ;;  %v800_v38 = vpop.f32.mrf.mxu0 }
 0x14f   : > { %v980_v18 = vadd.f32 %v979_v16, %v800_v38 }
 0x155   : > { %2173 = vmatpush3.bf16.xpose.msra.mxu0 %v3061_v32 }
 0x156   : > { %2250 = vmatprep.subr.msk.bf16.mxu0 %vm708_vm2, %v2999_v60 }
 0x15d   : > { %2175 = vmatpush3.bf16.xpose.msra.mxu0 %v3070_v35 }
 0x15e   : > { %2251 = vmatprep.subr.msk.bf16.mxu0 %vm708_vm2, %v3016_v61 }
 0x165   : > { %2177 = vmatpush3.bf16.xpose.msra.mxu0 %v3084_v22  ;;  %v1320_v60 = vpop.f32.mrf.mxu1 }
 0x167   : > { %v1322_v32 = vpop.f32.mrf.mxu1 }
 0x169   : > { %v1324_v19 = vpop.f32.mrf.mxu1 }
 0x16b   : > { %v1326_v35 = vpop.f32.mrf.mxu1 }
 0x16c   : > { %2179 = vmatmul.mubr.msk.bf16.vlgmr.msra.gmra.mxu0 %vm708_vm2, %v2305_v39  ;;  %v1254_v1 = vpop.f32.mrf.mxu0 }
 0x16d   : > { %v1263_v10 = vadd.f32 %v1254_v1, %v974_v47 }
 0x16e   : > { %v1256_v44 = vpop.f32.mrf.mxu0 }
 0x16f   : > { %v1264_v51 = vadd.f32 %v1256_v44, %v976_v50  ;;  %v1329_v5 = vadd.f32 %v1320_v60, %v1263_v10 }
 0x170   : > { %v1258_v14 = vpop.f32.mrf.mxu0 }
 0x171   : > { %v1265_v42 = vadd.f32 %v1258_v14, %v978_v41  ;;  %v1330_v63 = vadd.f32 %v1322_v32, %v1264_v51 }
 0x172   : > { %v1260_v58 = vpop.f32.mrf.mxu0  ;;  %v1724_v15 = vpop.permute.xlu0 %1723 }
 0x173   : > { %v1266_v33 = vadd.f32 %v1260_v58, %v980_v18  ;;  %v1331_v37 = vadd.f32 %v1324_v19, %v1265_v42 }
 0x175   : > { %v1332_v24 = vadd.f32 %v1326_v35, %v1266_v33 }
 0x182   : > { %v1729_v29 = vpop.permute.xlu0 %1728 }
 0x1a5   : > { %v1480_v62 = vpop.f32.mrf.mxu1 }
 0x1a7   : > { %v1482_v36 = vpop.f32.mrf.mxu1 }
 0x1a9   : > { %v1484_v54 = vpop.f32.mrf.mxu1 }
 0x1ab   : > { %v1486_v48 = vpop.f32.mrf.mxu1 }
 0x1ac   : > { %v1408_v61 = vpop.f32.mrf.mxu0 }
 0x1ad   : > { %v1417_v57 = vadd.f32 %v1408_v61, %v1329_v5 }
 0x1ae   : > { %v1410_v56 = vpop.f32.mrf.mxu0 }
 0x1af   : > { %v1418_v20 = vadd.f32 %v1410_v56, %v1330_v63  ;;  %v1489_v43 = vadd.f32 %v1480_v62, %v1417_v57 }
 0x1b0   : > { %v1412_v22 = vpop.f32.mrf.mxu0 }
 0x1b1   : > { %v1419_v45 = vadd.f32 %v1412_v22, %v1331_v37  ;;  %v1490_v4 = vadd.f32 %v1482_v36, %v1418_v20 }
 0x1b2   : > { %v1414_v9 = vpop.f32.mrf.mxu0 }
 0x1b3   : > { %v1420_v8 = vadd.f32 %v1414_v9, %v1332_v24  ;;  %v1491_v7 = vadd.f32 %v1484_v54, %v1419_v45 }
 0x1b5   : > { %v1492_v28 = vadd.f32 %v1486_v48, %v1420_v8 }
 0x1e5   : > { %v1634_v21 = vpop.f32.mrf.mxu1 }
 0x1e7   : > { %v1636_v46 = vpop.f32.mrf.mxu1 }
 0x1e9   : > { %v1638_v34 = vpop.f32.mrf.mxu1 }
 0x1eb   : > { %v1640_v26 = vpop.f32.mrf.mxu1 }
 0x1ec   : > { %v1546_v27 = vpop.f32.mrf.mxu0 }
 0x1ed   : > { %v1555_v2 = vadd.f32 %v1546_v27, %v1489_v43 }
 0x1ee   : > { %v1548_v40 = vpop.f32.mrf.mxu0 }
 0x1ef   : > { %v1556_v17 = vadd.f32 %v1548_v40, %v1490_v4  ;;  %v1643_v55 = vadd.f32 %v1634_v21, %v1555_v2 }
 0x1f0   : > { %v1550_v31 = vpop.f32.mrf.mxu0 }
 0x1f1   : > { %v1557_v23 = vadd.f32 %v1550_v31, %v1491_v7  ;;  %v1644_v52 = vadd.f32 %v1636_v46, %v1556_v17 }
 0x1f2   : > { %v1552_v25 = vpop.f32.mrf.mxu0 }
 0x1f3   : > { %v1558_v39 = vadd.f32 %v1552_v25, %v1492_v28  ;;  %v1645_v6 = vadd.f32 %v1638_v34, %v1557_v23 }
 0x1f5   : > { %v1646_v38 = vadd.f32 %v1640_v26, %v1558_v39 }
 0x22c   : > { %v1706_v11 = vpop.f32.mrf.mxu0 }
 0x22d   : > { %v1715_v12 = vadd.f32 %v1706_v11, %v1643_v55 }
 0x22e   : > { %v1708_v59 = vpop.f32.mrf.mxu0 }
 0x22f   : > { %v3315_v13 = vadd.f32 %v1724_v15, %v1715_v12  ;;  %v1716_v30 = vadd.f32 %v1708_v59, %v1644_v52 }
 0x230   : > { %v1710_v53 = vpop.f32.mrf.mxu0 }
 0x231   : > { %v1735_v3 = vand.u32 2147483647, %v3315_v13  ;;  %v3318_v49 = vadd.f32 %v1724_v15, %v1716_v30  ;;  %v1717_v0 = vadd.f32 %v1710_v53, %v1645_v6  ;;  %vm1755_vm7 = vcmp.ge.f32.partialorder %v3315_v13, 0.0 }
 0x232   : > { %v1712_v1 = vpop.f32.mrf.mxu0 }
 0x233   : > { %v1739_v16 = vsub.f32 0.0, %v1735_v3  ;;  %v1736_v44 = vand.u32 2147483647, %v3318_v49  ;;  %v3321_v60 = vadd.f32 %v1729_v29, %v1717_v0  ;;  %v1718_v14 = vadd.f32 %v1712_v1, %v1646_v38 }
 0x234   : > { %vm1756_vm8 = vcmp.ge.f32.partialorder %v3318_v49, 0.0 }
 0x235   : > { %v1743_v32 = vmul.f32 1.442695, %v1739_v16  ;;  %v1740_v58 = vsub.f32 0.0, %v1736_v44  ;;  %v1737_v19 = vand.u32 2147483647, %v3321_v60  ;;  %v3324_v61 = vadd.f32 %v1729_v29, %v1718_v14 }
 0x236   : > { %vm1757_vm9 = vcmp.ge.f32.partialorder %v3321_v60, 0.0 }
 0x237   : > { %2306 = vpow2.f32 %v1743_v32  ;;  %v1745_v35 = vmul.f32 1.442695, %v1740_v58  ;;  %v1741_v56 = vsub.f32 0.0, %v1737_v19  ;;  %v1738_v62 = vand.u32 2147483647, %v3324_v61 }
 0x238   : > { %vm1758_vm10 = vcmp.ge.f32.partialorder %v3324_v61, 0.0 }
 0x239   : > { %2308 = vpow2.f32 %v1745_v35  ;;  %v1747_v22 = vmul.f32 1.442695, %v1741_v56  ;;  %v1742_v47 = vsub.f32 0.0, %v1738_v62 }
 0x23b   : > { %2310 = vpow2.f32 %v1747_v22  ;;  %v1749_v36 = vmul.f32 1.442695, %v1742_v47 }
 0x23d   : > { %2312 = vpow2.f32 %v1749_v36 }
 0x244   : > { %v2307_v50 = vpop.eup %2306 }
 0x245   : > { %v1751_v10 = vmul.f32 %v2307_v50, %v2307_v50  ;;  %v1759_v9 = vmul.f32 2.0, %v2307_v50 }
 0x246   : > { %v2309_v41 = vpop.eup %2308 }
 0x247   : > { %v1763_v51 = vadd.f32 1.0, %v1759_v9  ;;  %v1775_v54 = vmul.f32 2.0, %v1751_v10  ;;  %v1783_v27 = vadd.f32 2.0, %v1759_v9  ;;  %v1752_v42 = vmul.f32 %v2309_v41, %v2309_v41 }
 0x248   : > { %v2311_v5 = vpop.eup %2310  ;;  %v1760_v18 = vmul.f32 2.0, %v2309_v41  ;;  %v1767_v12 = vadd.f32 %v1759_v9, %v1751_v10 }
 0x249   : > { %v1779_v63 = vadd.f32 %v1775_v54, %v1763_v51  ;;  %v1787_v57 = vadd.f32 %v1783_v27, %v1751_v10  ;;  %v1753_v48 = vmul.f32 %v2311_v5, %v2311_v5  ;;  %v1776_v40 = vmul.f32 2.0, %v1752_v42 }
 0x24a   : > { %v1764_v33 = vadd.f32 1.0, %v1760_v18  ;;  %v1784_v37 = vadd.f32 2.0, %v1760_v18  ;;  %v2313_v20 = vpop.eup %2312  ;;  %v1761_v43 = vmul.f32 2.0, %v2311_v5  ;;  %v1768_v39 = vadd.f32 %v1760_v18, %v1752_v42 }
 0x24b   : > { %v1791_v21 = vsel %vm1755_vm7, %v1779_v63, %v1787_v57  ;;  %v1777_v45 = vmul.f32 2.0, %v1753_v48  ;;  %v1754_v46 = vmul.f32 %v2313_v20, %v2313_v20  ;;  %v1762_v7 = vmul.f32 2.0, %v2313_v20 }
 0x24c   : > { %2314 = vrcp.f32 %v1791_v21  ;;  %v1780_v24 = vadd.f32 %v1776_v40, %v1764_v33  ;;  %v1788_v31 = vadd.f32 %v1784_v37, %v1752_v42  ;;  %v1765_v4 = vadd.f32 1.0, %v1761_v43 }
 0x24d   : > { %v1785_v2 = vadd.f32 2.0, %v1761_v43  ;;  %v1766_v55 = vadd.f32 1.0, %v1762_v7  ;;  %v1778_v23 = vmul.f32 2.0, %v1754_v46  ;;  %v1786_v34 = vadd.f32 2.0, %v1762_v7 }
 0x24e   : > { %v1792_v8 = vsel %vm1756_vm8, %v1780_v24, %v1788_v31  ;;  %v1781_v17 = vadd.f32 %v1777_v45, %v1765_v4  ;;  %v1771_v6 = vsel %vm1755_vm7, %v1763_v51, %v1767_v12  ;;  %v1769_v30 = vadd.f32 %v1761_v43, %v1753_v48 }
 0x24f   : > { %2316 = vrcp.f32 %v1792_v8  ;;  %v1789_v25 = vadd.f32 %v1785_v2, %v1753_v48  ;;  %v1782_v15 = vadd.f32 %v1778_v23, %v1766_v55  ;;  %v1790_v11 = vadd.f32 %v1786_v34, %v1754_v46 }
 0x250   : > { %v1772_v0 = vsel %vm1756_vm8, %v1764_v33, %v1768_v39  ;;  %v1770_v29 = vadd.f32 %v1762_v7, %v1754_v46  ;;  %v1773_v44 = vsel %vm1757_vm9, %v1765_v4, %v1769_v30 }
 0x251   : > { %v1793_v28 = vsel %vm1757_vm9, %v1781_v17, %v1789_v25  ;;  %v1794_v52 = vsel %vm1758_vm10, %v1782_v15, %v1790_v11 }
 0x252   : > { %2318 = vrcp.f32 %v1793_v28 }
 0x253   : > { %2320 = vrcp.f32 %v1794_v52 }
 0x259   : > { %v2315_v59 = vpop.eup %2314 }
 0x25a   : > { %v1799_v26 = vmul.f32 %v2315_v59, %v1771_v6 }
 0x25c   : > { %v2317_v53 = vpop.eup %2316  ;;  %v1803_v3 = vmul.f32 %v1799_v26, %v3315_v13  ;;  %v1774_v13 = vsel %vm1758_vm10, %v1766_v55, %v1770_v29 }
 0x25d   : > { %v1800_v38 = vmul.f32 %v2317_v53, %v1772_v0 }
 0x25e   : > { %1807 = vst [vmem:[%s206_s22] sm:$0xff] %v1803_v3 }
 0x25f   : > { %v2319_v1 = vpop.eup %2318  ;;  %v1804_v16 = vmul.f32 %v1800_v38, %v3318_v49 }
 0x260   : > { %v1801_v14 = vmul.f32 %v2319_v1, %v1773_v44  ;;  %v2321_v32 = vpop.eup %2320 }
 0x261   : > { %1808 = vst [vmem:[%s206_s22 + $0x8] sm:$0xff] %v1804_v16  ;;  %v1802_v19 = vmul.f32 %v2321_v32, %v1774_v13 }
 0x262   : > { %v1805_v58 = vmul.f32 %v1801_v14, %v3321_v60 }
 0x263   : > { %v1806_v35 = vmul.f32 %v1802_v19, %v3324_v61 }
 0x264   : > { %1809 = vst [vmem:[%s206_s22 + $0x10] sm:$0xff] %v1805_v58 }
 0x265   : > { %1810 = vst [vmem:[%s206_s22 + $0x18] sm:$0xff] %v1806_v35 }
 0x266 PF: > { %s13_s14 = sadd.s32 1, %s2344_s14   ;;  %s3511_s12 = smov %s2340_s13 }
 0x267   : > { %p10_p5 = scmp.ge.s32.totalorder %s13_s14, 4   ;;  %s3512_s13 = smov %s3514_s15 }
 0x269   :  { %12 = sbr.rel (!%p10_p5) target bundleno = 2 (0x2), region = 70 }

</bundles_post_ra>
